<compile_context>
chip_gen: v7x
topology: tpu7x:2x2x1
jax: 0.10.0
libtpu: 0.0.40
codegen_flags: <defaults>
</compile_context>

<pallas_src>
import jax
import jax.numpy as jnp
import numpy as np
from jax.experimental import pallas as pl
from jax.experimental.pallas import tpu as pltpu


def _score_kernel(hid_ref, w_ref, wans_ref, out_ref, m_scr, s_scr):
    """One grid step = (one M-tile of flattened (context, token) rows, one V-tile).

    hid_ref  : (tm, H)  bf16  hidden states for this row tile (resident across j)
    w_ref    : (H, tv)  bf16  vocab-projection V-tile
    wans_ref : (tm, H)  bf16  per-row pre-gathered answer column of W (resident)
    out_ref  : (tm, 128) f32  per-row log-prob, broadcast across lanes (resident)
    m_scr    : (tm, 1)  f32   running row max (online LSE)
    s_scr    : (tm, 1)  f32   running rescaled sum-exp (online LSE)
    """
    j = pl.program_id(1)

    @pl.when(j == 0)
    def _init():
        m_scr[...] = jnp.full_like(m_scr, -jnp.inf)
        s_scr[...] = jnp.zeros_like(s_scr)

    # (tm, tv) logits for this V-tile: bf16 operands, f32 accumulation on the MXU.
    logits = jnp.dot(hid_ref[...], w_ref[...],
                     preferred_element_type=jnp.float32)

    # Online log-sum-exp update over the vocab axis.
    m_prev = m_scr[...]                                              # (tm, 1)
    m_new = jnp.maximum(m_prev, jnp.max(logits, axis=-1, keepdims=True))
    s_scr[...] = (s_scr[...] * jnp.exp(m_prev - m_new)
                  + jnp.sum(jnp.exp(logits - m_new), axis=-1, keepdims=True))
    m_scr[...] = m_new

    @pl.when(j == pl.num_programs(1) - 1)
    def _finalize():
        # Target logit: <hidden_row, W[:, answer_id_of_row]> via VPU mul+reduce
        # over H (no one-hot gather over the vocab axis).
        tgt = jnp.sum(hid_ref[...].astype(jnp.float32)
                      * wans_ref[...].astype(jnp.float32),
                      axis=-1, keepdims=True)                        # (tm, 1)
        lse = m_scr[...] + jnp.log(s_scr[...])                       # (tm, 1)
        out_ref[...] = jnp.broadcast_to(tgt - lse, out_ref.shape)    # lane-dense


def reader_scores(hidden, w_vocab, answer_ids, *, tm=128, tv=512):
    """Pallas equivalent of Reader.forward's per-context answer probability.

    hidden     : (C, T, H) float32 — LM hidden states at the answer positions
    w_vocab    : (H, V)    float32 — LM head (vocab projection)
    answer_ids : (T,)      int32   — answer token ids (shared across contexts)
    returns    : (C,)      float32 — probability of the answer for each context
    """
    C, T, H = hidden.shape
    Hw, V = w_vocab.shape
    assert Hw == H
    LANE = 128

    if V % tv != 0:
        tv = V            # fall back to a single V tile for odd vocab sizes

    # Flatten (context, token) into the matmul M axis and pad to the M tile.
    M = C * T
    Mp = pl.cdiv(M, tm) * tm
    hid_flat = hidden.reshape(M, H)

    # Pre-gather the answer columns of W: row (c*T + t) gets W[:, answer_ids[t]].
    w_ans = jnp.take(w_vocab, answer_ids.astype(jnp.int32), axis=1).T   # (T, H)
    wans_rows = jnp.tile(w_ans, (C, 1))                                 # (M, H)

    pad = Mp - M
    if pad:
        hid_flat = jnp.pad(hid_flat, ((0, pad), (0, 0)))
        wans_rows = jnp.pad(wans_rows, ((0, pad), (0, 0)))

    # bf16 matmul operands (f32 accumulation in-kernel) — halves W HBM traffic
    # and doubles MXU throughput; matches the bf16/fp16 weights of real readers.
    hid_bf = hid_flat.astype(jnp.bfloat16)
    wans_bf = wans_rows.astype(jnp.bfloat16)
    w_bf = w_vocab.astype(jnp.bfloat16)

    num_m = Mp // tm
    num_v = V // tv

    # Double-buffered tile footprint; clamp the scoped-VMEM request so it is
    # safe on every generation (v7x has only 64 MiB physical VMEM).
    tile_vmem = (
        2 * tm * H * 2        # hidden rows, bf16
        + 2 * H * tv * 2      # vocab-projection V-tile, bf16
        + 2 * tm * H * 2      # pre-gathered answer columns, bf16
        + 2 * tm * LANE * 4   # output block, f32
        + 2 * tm * LANE * 4   # m/s scratch (lane-padded)
    )
    vmem_limit = int(min(64 << 20, max(32 << 20, 2 * tile_vmem)))

    out = pl.pallas_call(
        _score_kernel,
        out_shape=jax.ShapeDtypeStruct((Mp, LANE), jnp.float32),
        grid_spec=pltpu.PrefetchScalarGridSpec(
            num_scalar_prefetch=0,
            grid=(num_m, num_v),
            in_specs=[
                pl.BlockSpec((tm, H), lambda i, j: (i, 0)),   # hidden rows (resident over j)
                pl.BlockSpec((H, tv), lambda i, j: (0, j)),   # W V-tile (streamed)
                pl.BlockSpec((tm, H), lambda i, j: (i, 0)),   # answer cols (resident over j)
            ],
            out_specs=pl.BlockSpec((tm, LANE), lambda i, j: (i, 0)),
            scratch_shapes=[
                pltpu.VMEM((tm, 1), jnp.float32),   # running max
                pltpu.VMEM((tm, 1), jnp.float32),   # running sum-exp
            ],
        ),
        compiler_params=pltpu.CompilerParams(
            dimension_semantics=("parallel", "arbitrary"),
            vmem_limit_bytes=vmem_limit,
        ),
    )(hid_bf, w_bf, wans_bf)

    per_row_logp = out[:M, 0]                                   # (M,)
    per_ctx_logp = per_row_logp.reshape(C, T).sum(axis=-1)      # (C,)
    return jnp.exp(per_ctx_logp)


def reader_scores_ref(hidden, w_vocab, answer_ids):
    """Pure-JAX reference (same bf16-operand / f32-accumulation matmul)."""
    h = hidden.astype(jnp.bfloat16)
    w = w_vocab.astype(jnp.bfloat16)
    logits = jnp.einsum("cth,hv->ctv", h, w,
                        preferred_element_type=jnp.float32)      # (C, T, V)
    logp = jax.nn.log_softmax(logits, axis=-1)
    tok_logp = jnp.take_along_axis(
        logp, answer_ids[None, :, None].astype(jnp.int32), axis=-1)[..., 0]
    return jnp.exp(jnp.sum(tok_logp, axis=-1))                   # (C,)


if __name__ == "__main__":
    # Small shapes consistent with forward(): C contexts, T answer tokens,
    # hidden size H, vocab V.  M = C*T = 96 pads to one 128-row tile; V = 2048
    # splits into 4 V-tiles, exercising the online log-sum-exp.
    C, T, H, V = 12, 8, 256, 2048

    key = jax.random.PRNGKey(0)
    k_hid, k_w, k_ans = jax.random.split(key, 3)

    # Synthetic LM hidden states at the answer positions for each context.
    hidden = jax.random.normal(k_hid, (C, T, H), dtype=jnp.float32) * 0.5
    # Deterministic LM head (vocab projection).
    w_vocab = jax.random.normal(k_w, (H, V), dtype=jnp.float32) * 0.05
    # Answer token ids (shared across contexts, as in Reader.forward).
    answer_ids = jax.random.randint(k_ans, (T,), 0, V, dtype=jnp.int32)

    scores = jax.block_until_ready(reader_scores(hidden, w_vocab, answer_ids))
    ref = jax.block_until_ready(reader_scores_ref(hidden, w_vocab, answer_ids))

    scores_np = np.asarray(scores)
    ref_np = np.asarray(ref)
    assert scores_np.shape == (C,)
    assert np.all(np.isfinite(scores_np)), scores_np
    assert np.allclose(scores_np, ref_np, rtol=1e-2, atol=0.0), (scores_np, ref_np)
    print("KERNEL_OK")
</pallas_src>

<mosaic_0001>
module attributes {stable_mosaic.version = 11 : i64} {
  func.func @_score_kernel(%arg0: i32, %arg1: i32, %arg2: memref<128x256xbf16, #tpu.memory_space<vmem>>, %arg3: memref<256x512xbf16, #tpu.memory_space<vmem>>, %arg4: memref<128x256xbf16, #tpu.memory_space<vmem>>, %arg5: memref<128x128xf32, #tpu.memory_space<vmem>>, %arg6: memref<128x1xf32, #tpu.memory_space<vmem>>, %arg7: memref<128x1xf32, #tpu.memory_space<vmem>>) attributes {dimension_semantics = [#tpu.dimension_semantics<parallel>, #tpu.dimension_semantics<arbitrary>], iteration_bounds = array<i64: 1, 4>, scalar_prefetch = 0 : i64, scratch_operands = 2 : i64, tpu.core_type = #tpu.core_type<tc>, window_params = [{transform_indices = @transform_0, window_bounds = array<i64: 128, 256>}, {transform_indices = @transform_1, window_bounds = array<i64: 256, 512>}, {transform_indices = @transform_2, window_bounds = array<i64: 128, 256>}, {transform_indices = @transform_3, window_bounds = array<i64: 128, 128>}]} {
    %c0_i32 = arith.constant 0 : i32
    %0 = arith.cmpi eq, %arg1, %c0_i32 : i32
    %1 = arith.extui %0 : i1 to i32
    %c0_i32_0 = arith.constant 0 : i32
    %2 = arith.cmpi ne, %1, %c0_i32_0 : i32
    scf.if %2 {
      %cst_15 = arith.constant 0xFF800000 : f32
      %25 = vector.broadcast %cst_15 : f32 to vector<128x1xf32>
      %c0_16 = arith.constant 0 : index
      %c0_17 = arith.constant 0 : index
      %26 = vector.load %arg6[%c0_16, %c0_17] : memref<128x1xf32, #tpu.memory_space<vmem>>, vector<128x1xf32>
      tpu.vector_store %arg6[%c0_16, %c0_17], %25 {strides = array<i32>} : memref<128x1xf32, #tpu.memory_space<vmem>>, vector<128x1xf32>,
      %cst_18 = arith.constant 0.000000e+00 : f32
      %27 = vector.broadcast %cst_18 : f32 to vector<128x1xf32>
      %c0_19 = arith.constant 0 : index
      %c0_20 = arith.constant 0 : index
      %28 = vector.load %arg7[%c0_19, %c0_20] : memref<128x1xf32, #tpu.memory_space<vmem>>, vector<128x1xf32>
      tpu.vector_store %arg7[%c0_19, %c0_20], %27 {strides = array<i32>} : memref<128x1xf32, #tpu.memory_space<vmem>>, vector<128x1xf32>,
    } else {
    }
    %c0 = arith.constant 0 : index
    %c0_1 = arith.constant 0 : index
    %3 = vector.load %arg2[%c0, %c0_1] : memref<128x256xbf16, #tpu.memory_space<vmem>>, vector<128x256xbf16>
    %c0_2 = arith.constant 0 : index
    %c0_3 = arith.constant 0 : index
    %4 = vector.load %arg3[%c0_2, %c0_3] : memref<256x512xbf16, #tpu.memory_space<vmem>>, vector<256x512xbf16>
    %cst = arith.constant dense<0.000000e+00> : vector<128x512xf32>
    %5 = tpu.matmul %3, %4, %cst {dimension_numbers = #tpu.dot_dimension_numbers<[1], [0], [0], [1], [0, 0, 1, 1], [], []>} : vector<128x256xbf16>, vector<256x512xbf16>, vector<128x512xf32> -> vector<128x512xf32>
    %c0_4 = arith.constant 0 : index
    %c0_5 = arith.constant 0 : index
    %6 = vector.load %arg6[%c0_4, %c0_5] : memref<128x1xf32, #tpu.memory_space<vmem>>, vector<128x1xf32>
    %cst_6 = arith.constant dense<0xFF800000> : vector<128xf32>
    %7 = vector.multi_reduction <maximumf>, %5, %cst_6 [1] : vector<128x512xf32> to vector<128xf32>
    %8 = vector.shape_cast %7 : vector<128xf32> to vector<128x1xf32>
    %9 = arith.maximumf %6, %8 : vector<128x1xf32>
    %c0_7 = arith.constant 0 : index
    %c0_8 = arith.constant 0 : index
    %10 = vector.load %arg7[%c0_7, %c0_8] : memref<128x1xf32, #tpu.memory_space<vmem>>, vector<128x1xf32>
    %11 = arith.subf %6, %9 : vector<128x1xf32>
    %12 = math.exp %11 : vector<128x1xf32>
    %13 = arith.mulf %10, %12 : vector<128x1xf32>
    %14 = vector.broadcast %9 : vector<128x1xf32> to vector<128x512xf32>
    %15 = arith.subf %5, %14 : vector<128x512xf32>
    %16 = math.exp %15 : vector<128x512xf32>
    %cst_9 = arith.constant dense<0.000000e+00> : vector<128xf32>
    %17 = vector.multi_reduction <add>, %16, %cst_9 [1] : vector<128x512xf32> to vector<128xf32>
    %18 = vector.shape_cast %17 : vector<128xf32> to vector<128x1xf32>
    %19 = arith.addf %13, %18 : vector<128x1xf32>
    %c0_10 = arith.constant 0 : index
    %c0_11 = arith.constant 0 : index
    %20 = vector.load %arg7[%c0_10, %c0_11] : memref<128x1xf32, #tpu.memory_space<vmem>>, vector<128x1xf32>
    tpu.vector_store %arg7[%c0_10, %c0_11], %19 {strides = array<i32>} : memref<128x1xf32, #tpu.memory_space<vmem>>, vector<128x1xf32>,
    %c0_12 = arith.constant 0 : index
    %c0_13 = arith.constant 0 : index
    %21 = vector.load %arg6[%c0_12, %c0_13] : memref<128x1xf32, #tpu.memory_space<vmem>>, vector<128x1xf32>
    tpu.vector_store %arg6[%c0_12, %c0_13], %9 {strides = array<i32>} : memref<128x1xf32, #tpu.memory_space<vmem>>, vector<128x1xf32>,
    %c3_i32 = arith.constant 3 : i32
    %22 = arith.cmpi eq, %arg1, %c3_i32 : i32
    %23 = arith.extui %22 : i1 to i32
    %c0_i32_14 = arith.constant 0 : i32
    %24 = arith.cmpi ne, %23, %c0_i32_14 : i32
    scf.if %24 {
      %c0_15 = arith.constant 0 : index
      %c0_16 = arith.constant 0 : index
      %25 = vector.load %arg2[%c0_15, %c0_16] : memref<128x256xbf16, #tpu.memory_space<vmem>>, vector<128x256xbf16>
      %26 = arith.extf %25 : vector<128x256xbf16> to vector<128x256xf32>
      %c0_17 = arith.constant 0 : index
      %c0_18 = arith.constant 0 : index
      %27 = vector.load %arg4[%c0_17, %c0_18] : memref<128x256xbf16, #tpu.memory_space<vmem>>, vector<128x256xbf16>
      %28 = arith.extf %27 : vector<128x256xbf16> to vector<128x256xf32>
      %29 = arith.mulf %26, %28 : vector<128x256xf32>
      %cst_19 = arith.constant dense<0.000000e+00> : vector<128xf32>
      %30 = vector.multi_reduction <add>, %29, %cst_19 [1] : vector<128x256xf32> to vector<128xf32>
      %31 = vector.shape_cast %30 : vector<128xf32> to vector<128x1xf32>
      %c0_20 = arith.constant 0 : index
      %c0_21 = arith.constant 0 : index
      %32 = vector.load %arg6[%c0_20, %c0_21] : memref<128x1xf32, #tpu.memory_space<vmem>>, vector<128x1xf32>
      %c0_22 = arith.constant 0 : index
      %c0_23 = arith.constant 0 : index
      %33 = vector.load %arg7[%c0_22, %c0_23] : memref<128x1xf32, #tpu.memory_space<vmem>>, vector<128x1xf32>
      %34 = math.log %33 : vector<128x1xf32>
      %35 = arith.addf %32, %34 : vector<128x1xf32>
      %36 = arith.subf %31, %35 : vector<128x1xf32>
      %37 = vector.shape_cast %36 : vector<128x1xf32> to vector<128x1xf32>
      %38 = vector.broadcast %37 : vector<128x1xf32> to vector<128x128xf32>
      %c0_24 = arith.constant 0 : index
      %c0_25 = arith.constant 0 : index
      %39 = vector.load %arg5[%c0_24, %c0_25] : memref<128x128xf32, #tpu.memory_space<vmem>>, vector<128x128xf32>
      tpu.vector_store %arg5[%c0_24, %c0_25], %38 {strides = array<i32>} : memref<128x128xf32, #tpu.memory_space<vmem>>, vector<128x128xf32>,
    } else {
    }
    return
  }
  func.func @transform_0(%arg0: i32, %arg1: i32) -> (i32, i32) {
    %c0_i32 = arith.constant 0 : i32
    %c0_i32_0 = arith.constant 0 : i32
    return %arg0, %c0_i32 : i32, i32
  }
  func.func @transform_1(%arg0: i32, %arg1: i32) -> (i32, i32) {
    %c0_i32 = arith.constant 0 : i32
    %c0_i32_0 = arith.constant 0 : i32
    return %c0_i32, %arg1 : i32, i32
  }
  func.func @transform_2(%arg0: i32, %arg1: i32) -> (i32, i32) {
    %c0_i32 = arith.constant 0 : i32
    %c0_i32_0 = arith.constant 0 : i32
    return %arg0, %c0_i32 : i32, i32
  }
  func.func @transform_3(%arg0: i32, %arg1: i32) -> (i32, i32) {
    %c0_i32 = arith.constant 0 : i32
    %c0_i32_0 = arith.constant 0 : i32
    return %arg0, %c0_i32 : i32, i32
  }
}

</mosaic_0001>

<bundles_post_ra>
// kernel: tpu_custom_call.1
= control target key start
LH: loop header
LB: loop body
LE: loop exit
PB: predicated region body
PF: predicated region fallthrough
CT: control target
= control target key end

     0   :  { %8 = vsyncpa [#allocation5], 0  ;;  %s3560_s0 = inlined_call_operand.hbm [shape: bf16[128,256], index: 0, kind: input, shape index: {}]   ;;  %s3561_s1 = inlined_call_operand.hbm [shape: bf16[256,2048], index: 1, kind: input, shape index: {}]   ;;  %s3562_s2 = inlined_call_operand.hbm [shape: bf16[128,256], index: 2, kind: input, shape index: {}]   ;;  %s3563_s3 = inlined_call_operand.hbm [shape: f32[128,128], index: 3, kind: output, shape index: {}]  }
   0x1   :  { %9 = vsyncpa [#allocation8], 0 }
   0x2   :  { %11 = vsyncpa [#allocation8 + $0x1], 0 }
   0x3   :  { %12 = vsyncpa [#allocation6], 0  ;;  %s2771_s12 = smov 0   ;;  %s2773_s13 = smov 0  }
   0x4   :  { %s2775_s14 = smov 0   ;;  %s2777_s15 = smov 0  }
   0x5   :  { %s2779_s16 = smov 0   ;;  %s2781_s17 = smov 0  }
   0x6 LB: > { %s2800_s18 = sadd.s32 4294967295, %s2734_s17   ;;  %s63_s19 = sadd.s32 1, %s2722_s14  ;;  %s2734_s17 = sphi %s2781_s17, %s18_s17   ;;  %s2730_s16 = sphi %s2779_s16, %s3737_s16   ;;  %s2726_s15 = sphi %s2777_s15, %s3736_s15   ;;  %s2722_s14 = sphi %s2775_s14, %s3735_s14   ;;  %s2718_s13 = sphi %s2773_s13, %s3734_s13   ;;  %s2714_s12 = sphi %s2771_s12, %s3733_s12  }
   0x7   : > { %p70_p0 = scmp.ne.s32.totalorder %s2722_s14, %s2718_s13  ;;  %p71_p1 = scmp.eq.s32.totalorder %s2734_s17, 0 }
   0x8   : > { %p76_p2 = scmp.ne.s32.totalorder %s2718_s13, %s2714_s12  ;;  %p3564_p3 = scmp.eq.s32.totalorder %s2800_s18, 0 }
   0x9   : > { %p72_p4 = por %p71_p1, %p70_p0  ;;  %p2052_p5 = scmp.ge.s32.totalorder %s2734_s17, 1 }
   0xa   : > { %p2811_p6 = por %p3564_p3, %p76_p2  ;;  %p139_p7 = scmp.lt.s32.totalorder %s2734_s17, 5 }
   0xb   : > { %s2736_s22 = smov [#allocation9]   ;;  %p2177_p10 = scmp.lt.s32.totalorder %s2734_s17, 4 }
   0xc   : > { %s3614_s20 = scalar_select %p2811_p6, 1, 0 }
   0xd   : > { %p2816_p8 = pnand %p2052_p5, %p139_p7  ;;  %s172_s23 = sshll.u32 %s2736_s22, 4  ;;  %s173_s23 = int_to_ptr.vmem [resolvable:$true] %s172_s23 }
   0xe   : > { %p2829_p12 = pnand %p2177_p10, %p72_p4  ;;  %s2560_s28 = scalar_lea.hbm %s3562_s2, 2048 }
   0xf   : > { %s3615_s21 = scalar_select %p2816_p8, 1, 0 }
  0x10   : > { %p2164_p9 = pneg %p2816_p8  ;;  %p2561_p13 = scmp.ne.s32.totalorder %s3562_s2, %s2560_s28 }
  0x11   : > { %s3617_s25 = scalar_select %p2829_p12, 1, 0 }
  0x12   : > { %p2825_p11 = pnand %p2164_p9, %p3564_p3  ;;  %p2567_p4 = scmp.lt.u32.totalorder %s2560_s28, %s3562_s2 }
  0x14   : > { %p2562_p0 = pneg %p2825_p11 }
  0x16   : > { %p2563_p1 = pnand %p2562_p0, %p2561_p13 }
  0x18   : > { %p2564_p2 = pneg %p2563_p1 }
  0x1a   : > { %p2569_p5 = pnand %p2567_p4, %p2564_p2 }
  0x1c   : > { %2572 = shalt.err (!%p2569_p5)
}
  0x1d   : > { %s2573_s6 = scalar_lea.vmem %s173_s23, 2048  ;;  %p2581_p3 = scmp.lt.s32.totalorder %s173_s23, %s173_s23 }
  0x1e   : > { %p2574_p7 = scmp.ne.s32.totalorder %s173_s23, %s2573_s6  ;;  %p2582_p6 = scmp.lt.s32.totalorder %s2573_s6, %s2573_s6 }
  0x20   : > { %p2576_p9 = pnand %p2574_p7, %p2562_p0  ;;  %p2583_p8 = por %p2582_p6, %p2581_p3 }
  0x22   : > { %p2577_p10 = pneg %p2576_p9 }
  0x24   : > { %p2584_p12 = pnand %p2583_p8, %p2577_p10 }
  0x26   : > { %2587 = shalt.err (!%p2584_p12)
}
  0x27   : > { %s2737_s7 = smov 128   ;;  %s2738_s8 = smov 8  }
  0x28   : > { %2170 = dma.hbm_to_vmem [thread:$0]  (!%p2825_p11), %s3562_s2, 2048, %s173_s23, [#allocation8], %s2737_s7, %s2737_s7, %s2738_s8  }
  0x29   : > { %s2739_s11 = smov [#allocation4]   ;;  %s2588_s27 = scalar_lea.hbm %s3560_s0, 2048 }
  0x2a   : > { %s155_s12 = sshll.u32 %s2739_s11, 4  ;;  %p2589_p3 = scmp.ne.s32.totalorder %s3560_s0, %s2588_s27  ;;  %s156_s12 = int_to_ptr.vmem [resolvable:$true] %s155_s12 }
  0x2b   : > { %p2595_p12 = scmp.lt.u32.totalorder %s2588_s27, %s3560_s0 }
  0x2c   : > { %p2591_p6 = pnand %p2589_p3, %p2562_p0 }
  0x2e   : > { %p2592_p8 = pneg %p2591_p6 }
  0x30   : > { %p2597_p13 = pnand %p2595_p12, %p2592_p8 }
  0x32   : > { %2600 = shalt.err (!%p2597_p13)
}
  0x33   : > { %s2601_s23 = scalar_lea.vmem %s156_s12, 2048  ;;  %p2609_p5 = scmp.lt.s32.totalorder %s156_s12, %s156_s12 }
  0x34   : > { %p2602_p1 = scmp.ne.s32.totalorder %s156_s12, %s2601_s23  ;;  %p2610_p7 = scmp.lt.s32.totalorder %s2601_s23, %s2601_s23 }
  0x36   : > { %p2604_p2 = pnand %p2602_p1, %p2562_p0  ;;  %p2611_p9 = por %p2610_p7, %p2609_p5 }
  0x38   : > { %p2605_p4 = pneg %p2604_p2 }
  0x3a   : > { %p2612_p10 = pnand %p2611_p9, %p2605_p4 }
  0x3c   : > { %2615 = shalt.err (!%p2612_p10)
}
  0x3d   : > { %2167 = dma.hbm_to_vmem [thread:$0]  (!%p2825_p11), %s3560_s0, 2048, %s156_s12, [#allocation5], %s2737_s7, %s2737_s7, %s2738_s8  }
  0x3e   : > { %s186_s9 = sand.u32 1, %s2734_s17   ;;  %s27_s10 = sadd.s32 1, %s2730_s16 }
  0x3f   : > { %p28_p0 = scmp.ge.s32.totalorder %s27_s10, 4  ;;  %s188_s11 = sand.u32 1, %s2722_s14  }
  0x40   : > { %s2056_s22 = sshll.u32 %s188_s11, 9  ;;  %s2149_s26 = sshll.u32 %s2730_s16, 8 }
  0x41   : > { %s3739_s10 = smov (%p28_p0, %s27_s10), 0  ;;  %s2884_s28 = scalar_lea.hbm %s3561_s1, %s2149_s26 }
  0x42   : > { %s60_s7 = ssub.s32 %s2730_s16, %s3739_s10  ;;  %s190_s8 = scalar_lea.vmem [#allocation7], %s2056_s22 }
  0x43   : > { %s197_s12 = sshll.u32 %s190_s8, 4  ;;  %p61_p11 = scmp.eq.s32.totalorder %s60_s7, 0  ;;  %s2888_s12 = int_to_ptr.vmem [resolvable:$true] %s197_s12 }
  0x44   : > { %s2895_s30 = scalar_lea.sflag [#allocation8], %s186_s9  ;;  %s2616_s4 = scalar_lea.hbm %s2884_s28, 8192 }
  0x45   : > { %s2893_s29 = scalar_select %p61_p11, %s2722_s14, %s63_s19  }
  0x46   : > { %p2617_p3 = scmp.ne.s32.totalorder %s2884_s28, %s2616_s4  ;;  %p3618_p6 = scmp.ne.s32.totalorder %s3617_s25, 0 }
  0x47   : > { %s2621_s6 = scalar_lea.hbm %s3561_s1, 32768  ;;  %p2622_p1 = scmp.lt.u32.totalorder %s2884_s28, %s3561_s1 }
  0x48   : > { %p2618_p8 = pneg %p3618_p6  ;;  %p2623_p2 = scmp.lt.u32.totalorder %s2621_s6, %s2616_s4 }
  0x49   : > { %p2625_p5 = scmp.lt.u32.totalorder %s2616_s4, %s2884_s28 }
  0x4a   : > { %p2619_p12 = pnand %p2618_p8, %p2617_p3  ;;  %p2624_p4 = por %p2623_p2, %p2622_p1 }
  0x4c   : > { %p2620_p13 = pneg %p2619_p12  ;;  %p2626_p7 = por %p2625_p5, %p2624_p4 }
  0x4e   : > { %p2627_p9 = pnand %p2626_p7, %p2620_p13 }
  0x50   : > { %2630 = shalt.err (!%p2627_p9)
}
  0x51   : > { %s2631_s19 = scalar_lea.vmem %s2888_s12, 8192  ;;  %s2740_s9 = smov [#allocation7]  }
  0x52   : > { %p2632_p10 = scmp.ne.s32.totalorder %s2888_s12, %s2631_s19  ;;  %s2636_s26 = sshll.u32 %s2740_s9, 4  ;;  %s2637_s26 = int_to_ptr.vmem [resolvable:$false] %s2636_s26 }
  0x53   : > { %s2638_s24 = scalar_lea.vmem %s2637_s26, 16384  ;;  %p2639_p3 = scmp.lt.s32.totalorder %s2888_s12, %s2637_s26 }
  0x54   : > { %p2634_p0 = pnand %p2632_p10, %p2618_p8  ;;  %p2640_p12 = scmp.lt.s32.totalorder %s2638_s24, %s2631_s19 }
  0x56   : > { %p2635_p11 = pneg %p2634_p0  ;;  %p2641_p1 = por %p2640_p12, %p2639_p3 }
  0x58   : > { %p2642_p2 = pnand %p2641_p1, %p2635_p11 }
  0x5a   : > { %2645 = shalt.err (!%p2642_p2)
}
  0x5b   : > { %s2741_s27 = smov 1024   ;;  %s2742_s7 = smov 256  }
  0x5c   : > { %s2743_s8 = smov 16   ;;  %p3619_p8 = scmp.ne.s32.totalorder %s3615_s21, 0 }
  0x5d   : > { %2174 = dma.hbm_to_vmem [thread:$0]  (!%p3618_p6), %s2884_s28, 8192, %s2888_s12, %s2895_s30, %s2741_s27, %s2742_s7, %s2743_s8  }
  0x5e   : > { %209 = sbr.rel (%p3619_p8) target bundleno = 1245 (0x4dd), region = 32 }
  0x65   : > { %p3620_p13 = scmp.eq.s32.totalorder %s2800_s18, 0 }
  0x67   : > { %2697 = dma.done.wait (%p3620_p13), [#allocation5], 2048   ;;  %p3621_p4 = pmov %p3620_p13 }
  0x68   : > { %s215_s4 = sand.u32 1, %s2800_s18   ;;  %s217_s23 = sand.u32 1, %s2718_s13  }
  0x69   : > { %2699 = vsyncadd (%p3621_p4), [#allocation5], 4294965248  ;;  %s2061_s5 = sshll.u32 %s217_s23, 9  ;;  %s216_s6 = scalar_lea.sflag [#allocation8], %s215_s4 }
  0x6a   : > { %s2931_s11 = scalar_lea.vmem [#allocation7], %s2061_s5  ;;  %p3622_p5 = scmp.ne.s32.totalorder %s3614_s20, 0 }
  0x6c   : > { %2701 = dma.done.wait (%p3622_p5), %s216_s6, 8192  }
  0x6d   : > { %2703 = vsyncadd (%p3622_p5), %s216_s6, 4294959104  ;;  %p3623_p6 = pmov %p3621_p4 }
  0x6e   : > { %p3624_p7 = pmov %p3621_p4 }
  0x6f   : > { %2705 = dma.done.wait (%p3623_p6), [#allocation8], 2048  }
  0x70   : > { %2707 = vsyncadd (%p3624_p7), [#allocation8], 4294965248  ;;  %p2063_p9 = scmp.ne.s32.totalorder %s2726_s15, 0 }
  0x71   : > { %vm249_vm0 = vcmask (!%p2063_p9), 7168   ;;  %v2744_v0 = vmov (!%p2063_p9), -inf   ;;  %v2745_v1 = vmov (!%p2063_p9), 0.0  }
  0x72   : > { %248 = sbr.rel (%p2063_p9) target bundleno = 130 (0x82), region = 48  ;;  %250 = vst.msk [vmem:[#allocation2] sm:$0xff] (!%p2063_p9), %vm249_vm0, %v2744_v0  ;;  %251 = vst.msk [vmem:[#allocation2 + $0x8] sm:$0xff] (!%p2063_p9), %vm249_vm0, %v2744_v0 }
  0x73   : > { %252 = vst.msk [vmem:[#allocation2 + $0x10] sm:$0xff] (!%p2063_p9), %vm249_vm0, %v2744_v0  ;;  %253 = vst.msk [vmem:[#allocation2 + $0x18] sm:$0xff] (!%p2063_p9), %vm249_vm0, %v2744_v0 }
  0x74   : > { %254 = vst.msk [vmem:[#allocation2 + $0x20] sm:$0xff] (!%p2063_p9), %vm249_vm0, %v2744_v0  ;;  %255 = vst.msk [vmem:[#allocation2 + $0x28] sm:$0xff] (!%p2063_p9), %vm249_vm0, %v2744_v0 }
  0x75   : > { %256 = vst.msk [vmem:[#allocation2 + $0x30] sm:$0xff] (!%p2063_p9), %vm249_vm0, %v2744_v0  ;;  %257 = vst.msk [vmem:[#allocation2 + $0x38] sm:$0xff] (!%p2063_p9), %vm249_vm0, %v2744_v0 }
  0x76   : > { %258 = vst.msk [vmem:[#allocation2 + $0x40] sm:$0xff] (!%p2063_p9), %vm249_vm0, %v2744_v0  ;;  %259 = vst.msk [vmem:[#allocation2 + $0x48] sm:$0xff] (!%p2063_p9), %vm249_vm0, %v2744_v0 }
  0x77   : > { %260 = vst.msk [vmem:[#allocation2 + $0x50] sm:$0xff] (!%p2063_p9), %vm249_vm0, %v2744_v0  ;;  %261 = vst.msk [vmem:[#allocation2 + $0x58] sm:$0xff] (!%p2063_p9), %vm249_vm0, %v2744_v0 }
  0x78   : > { %262 = vst.msk [vmem:[#allocation2 + $0x60] sm:$0xff] (!%p2063_p9), %vm249_vm0, %v2744_v0  ;;  %263 = vst.msk [vmem:[#allocation2 + $0x68] sm:$0xff] (!%p2063_p9), %vm249_vm0, %v2744_v0 }
  0x79   : > { %264 = vst.msk [vmem:[#allocation2 + $0x70] sm:$0xff] %vm249_vm0, %v2744_v0  ;;  %265 = vst.msk [vmem:[#allocation2 + $0x78] sm:$0xff] %vm249_vm0, %v2744_v0 }
  0x7a   : > { %266 = vst.msk [vmem:[#allocation3] sm:$0xff] %vm249_vm0, %v2745_v1  ;;  %267 = vst.msk [vmem:[#allocation3 + $0x8] sm:$0xff] %vm249_vm0, %v2745_v1 }
  0x7b   : > { %268 = vst.msk [vmem:[#allocation3 + $0x10] sm:$0xff] %vm249_vm0, %v2745_v1  ;;  %269 = vst.msk [vmem:[#allocation3 + $0x18] sm:$0xff] %vm249_vm0, %v2745_v1 }
  0x7c   : > { %270 = vst.msk [vmem:[#allocation3 + $0x20] sm:$0xff] %vm249_vm0, %v2745_v1  ;;  %271 = vst.msk [vmem:[#allocation3 + $0x28] sm:$0xff] %vm249_vm0, %v2745_v1 }
  0x7d   : > { %272 = vst.msk [vmem:[#allocation3 + $0x30] sm:$0xff] %vm249_vm0, %v2745_v1  ;;  %273 = vst.msk [vmem:[#allocation3 + $0x38] sm:$0xff] %vm249_vm0, %v2745_v1 }
  0x7e   : > { %274 = vst.msk [vmem:[#allocation3 + $0x40] sm:$0xff] %vm249_vm0, %v2745_v1  ;;  %275 = vst.msk [vmem:[#allocation3 + $0x48] sm:$0xff] %vm249_vm0, %v2745_v1 }
  0x7f   : > { %276 = vst.msk [vmem:[#allocation3 + $0x50] sm:$0xff] %vm249_vm0, %v2745_v1  ;;  %277 = vst.msk [vmem:[#allocation3 + $0x58] sm:$0xff] %vm249_vm0, %v2745_v1 }
  0x80   : > { %278 = vst.msk [vmem:[#allocation3 + $0x60] sm:$0xff] %vm249_vm0, %v2745_v1  ;;  %279 = vst.msk [vmem:[#allocation3 + $0x68] sm:$0xff] %vm249_vm0, %v2745_v1 }
  0x81   : > { %280 = vst.msk [vmem:[#allocation3 + $0x70] sm:$0xff] %vm249_vm0, %v2745_v1  ;;  %281 = vst.msk [vmem:[#allocation3 + $0x78] sm:$0xff] %vm249_vm0, %v2745_v1 }
  0x82 PF: > { %v2246_v2 = vld [vmem:[%s2931_s11 + $0x4] ss:$16 sps:$4 sm:$0xff]   ;;  %v2248_v3 = vld [vmem:[%s2931_s11 + $0xc] ss:$16 sps:$4 sm:$0xff]   ;;  %v2250_v4 = vld [vmem:[%s2931_s11] ss:$16 sps:$4 sm:$0xff]  }
  0x83   : > { %762 = vmatprep.subr.bf16.mxu0 %v2246_v2  ;;  %v2251_v5 = vld [vmem:[%s2931_s11 + $0x8] ss:$16 sps:$4 sm:$0xff]   ;;  %875 = vmatprep.subr.bf16.mxu1 %v2248_v3  ;;  %v2252_v6 = vld [vmem:[%s2931_s11 + $0x24] ss:$16 sps:$4 sm:$0xff]   ;;  %v2254_v7 = vld [vmem:[%s2931_s11 + $0x2c] ss:$16 sps:$4 sm:$0xff]  }
  0x84   : > { %763 = vmatpush1.bf16.msra.mxu0 %v2250_v4  ;;  %876 = vmatpush1.bf16.msra.mxu1 %v2251_v5  ;;  %v2256_v8 = vld [vmem:[%s2931_s11 + $0x20] ss:$16 sps:$4 sm:$0xff]   ;;  %v2257_v9 = vld [vmem:[%s2931_s11 + $0x28] ss:$16 sps:$4 sm:$0xff]   ;;  %v2258_v10 = vld [vmem:[%s2931_s11 + $0x44] ss:$16 sps:$4 sm:$0xff]  }
  0x85   : > { %764 = vmatprep.subr.bf16.mxu0 %v2252_v6  ;;  %877 = vmatprep.subr.bf16.mxu1 %v2254_v7  ;;  %v2260_v11 = vld [vmem:[%s2931_s11 + $0x4c] ss:$16 sps:$4 sm:$0xff]   ;;  %v2262_v12 = vld [vmem:[%s2931_s11 + $0x40] ss:$16 sps:$4 sm:$0xff]   ;;  %v2263_v13 = vld [vmem:[%s2931_s11 + $0x48] ss:$16 sps:$4 sm:$0xff]  }
  0x86   : > { %v2264_v14 = vld [vmem:[%s2931_s11 + $0x64] ss:$16 sps:$4 sm:$0xff]   ;;  %v2266_v15 = vld [vmem:[%s2931_s11 + $0x6c] ss:$16 sps:$4 sm:$0xff]   ;;  %v2268_v16 = vld [vmem:[%s2931_s11 + $0x60] ss:$16 sps:$4 sm:$0xff]  }
  0x87   : > { %v2269_v17 = vld [vmem:[%s2931_s11 + $0x68] ss:$16 sps:$4 sm:$0xff]   ;;  %v2270_v18 = vld [vmem:[%s2931_s11 + $0x84] ss:$16 sps:$4 sm:$0xff]   ;;  %v2272_v19 = vld [vmem:[%s2931_s11 + $0x8c] ss:$16 sps:$4 sm:$0xff]  }
  0x88   : > { %765 = vmatpush1.bf16.msra.mxu0 %v2256_v8  ;;  %878 = vmatpush1.bf16.msra.mxu1 %v2257_v9  ;;  %v2274_v20 = vld [vmem:[%s2931_s11 + $0x80] ss:$16 sps:$4 sm:$0xff]   ;;  %v2275_v21 = vld [vmem:[%s2931_s11 + $0x88] ss:$16 sps:$4 sm:$0xff]   ;;  %v2276_v22 = vld [vmem:[%s2931_s11 + $0xa4] ss:$16 sps:$4 sm:$0xff]  }
  0x89   : > { %766 = vmatprep.subr.bf16.mxu0 %v2258_v10  ;;  %879 = vmatprep.subr.bf16.mxu1 %v2260_v11  ;;  %v2278_v23 = vld [vmem:[%s2931_s11 + $0xac] ss:$16 sps:$4 sm:$0xff]   ;;  %v2280_v24 = vld [vmem:[%s2931_s11 + $0xa0] ss:$16 sps:$4 sm:$0xff]   ;;  %v2281_v25 = vld [vmem:[%s2931_s11 + $0xa8] ss:$16 sps:$4 sm:$0xff]  }
  0x8a   : > { %v2282_v26 = vld [vmem:[%s2931_s11 + $0xc4] ss:$16 sps:$4 sm:$0xff]   ;;  %v2284_v27 = vld [vmem:[%s2931_s11 + $0xcc] ss:$16 sps:$4 sm:$0xff]   ;;  %v2286_v28 = vld [vmem:[%s2931_s11 + $0xc0] ss:$16 sps:$4 sm:$0xff]  }
  0x8b   : > { %v2287_v29 = vld [vmem:[%s2931_s11 + $0xc8] ss:$16 sps:$4 sm:$0xff]   ;;  %v2288_v30 = vld [vmem:[%s2931_s11 + $0xe4] ss:$16 sps:$4 sm:$0xff]   ;;  %v2290_v31 = vld [vmem:[%s2931_s11 + $0xec] ss:$16 sps:$4 sm:$0xff]  }
  0x8c   : > { %767 = vmatpush1.bf16.msra.mxu0 %v2262_v12  ;;  %880 = vmatpush1.bf16.msra.mxu1 %v2263_v13  ;;  %v2292_v32 = vld [vmem:[%s2931_s11 + $0xe0] ss:$16 sps:$4 sm:$0xff]   ;;  %v2293_v33 = vld [vmem:[%s2931_s11 + $0xe8] ss:$16 sps:$4 sm:$0xff]   ;;  %v2294_v34 = vld [vmem:[%s2931_s11 + $0x104] ss:$16 sps:$4 sm:$0xff]  }
  0x8d   : > { %768 = vmatprep.subr.bf16.mxu0 %v2264_v14  ;;  %881 = vmatprep.subr.bf16.mxu1 %v2266_v15  ;;  %v2296_v35 = vld [vmem:[%s2931_s11 + $0x10c] ss:$16 sps:$4 sm:$0xff]   ;;  %v2298_v36 = vld [vmem:[%s2931_s11 + $0x100] ss:$16 sps:$4 sm:$0xff]   ;;  %v2299_v37 = vld [vmem:[%s2931_s11 + $0x108] ss:$16 sps:$4 sm:$0xff]  }
  0x8e   : > { %v2300_v38 = vld [vmem:[%s2931_s11 + $0x124] ss:$16 sps:$4 sm:$0xff]   ;;  %v2302_v39 = vld [vmem:[%s2931_s11 + $0x12c] ss:$16 sps:$4 sm:$0xff]   ;;  %v2304_v40 = vld [vmem:[%s2931_s11 + $0x120] ss:$16 sps:$4 sm:$0xff]  }
  0x8f   : > { %v2305_v41 = vld [vmem:[%s2931_s11 + $0x128] ss:$16 sps:$4 sm:$0xff]   ;;  %v2306_v42 = vld [vmem:[%s2931_s11 + $0x144] ss:$16 sps:$4 sm:$0xff]   ;;  %v2308_v43 = vld [vmem:[%s2931_s11 + $0x14c] ss:$16 sps:$4 sm:$0xff]  }
  0x90   : > { %769 = vmatpush1.bf16.msra.mxu0 %v2268_v16  ;;  %882 = vmatpush1.bf16.msra.mxu1 %v2269_v17  ;;  %v2310_v44 = vld [vmem:[%s2931_s11 + $0x140] ss:$16 sps:$4 sm:$0xff]   ;;  %v2311_v45 = vld [vmem:[%s2931_s11 + $0x148] ss:$16 sps:$4 sm:$0xff]   ;;  %v2312_v46 = vld [vmem:[%s2931_s11 + $0x164] ss:$16 sps:$4 sm:$0xff]  }
  0x91   : > { %770 = vmatprep.subr.bf16.mxu0 %v2270_v18  ;;  %883 = vmatprep.subr.bf16.mxu1 %v2272_v19  ;;  %v2314_v47 = vld [vmem:[%s2931_s11 + $0x16c] ss:$16 sps:$4 sm:$0xff]   ;;  %v2316_v48 = vld [vmem:[%s2931_s11 + $0x160] ss:$16 sps:$4 sm:$0xff]   ;;  %v2317_v49 = vld [vmem:[%s2931_s11 + $0x168] ss:$16 sps:$4 sm:$0xff]  }
  0x92   : > { %v2344_v50 = vld [vmem:[#allocation4 + $0x4] ss:$8 sps:$4 sm:$0xff]   ;;  %v2322_v53 = vld [vmem:[%s2931_s11 + $0x180] ss:$16 sps:$4 sm:$0xff]   ;;  %v2323_v54 = vld [vmem:[%s2931_s11 + $0x188] ss:$16 sps:$4 sm:$0xff]  }
  0x93   : > { %v2318_v51 = vld [vmem:[%s2931_s11 + $0x184] ss:$16 sps:$4 sm:$0xff]   ;;  %v2320_v52 = vld [vmem:[%s2931_s11 + $0x18c] ss:$16 sps:$4 sm:$0xff]   ;;  %794 = vmatprep.mubr.bf16.mxu0 %v2344_v50  ;;  %907 = vmatprep.mubr.bf16.mxu1 %v2344_v50  ;;  %v2328_v57 = vld [vmem:[%s2931_s11 + $0x1a0] ss:$16 sps:$4 sm:$0xff]  }
  0x94   : > { %771 = vmatpush1.bf16.msra.mxu0 %v2274_v20  ;;  %884 = vmatpush1.bf16.msra.mxu1 %v2275_v21  ;;  %v2324_v55 = vld [vmem:[%s2931_s11 + $0x1a4] ss:$16 sps:$4 sm:$0xff]   ;;  %v2326_v56 = vld [vmem:[%s2931_s11 + $0x1ac] ss:$16 sps:$4 sm:$0xff]   ;;  %v2329_v58 = vld [vmem:[%s2931_s11 + $0x1a8] ss:$16 sps:$4 sm:$0xff]  }
  0x95   : > { %772 = vmatprep.subr.bf16.mxu0 %v2276_v22  ;;  %885 = vmatprep.subr.bf16.mxu1 %v2278_v23  ;;  %v2330_v59 = vld [vmem:[%s2931_s11 + $0x1c4] ss:$16 sps:$4 sm:$0xff]   ;;  %v2332_v60 = vld [vmem:[%s2931_s11 + $0x1cc] ss:$16 sps:$4 sm:$0xff]   ;;  %v2334_v61 = vld [vmem:[%s2931_s11 + $0x1c0] ss:$16 sps:$4 sm:$0xff]  }
  0x96   : > { %v2335_v62 = vld [vmem:[%s2931_s11 + $0x1c8] ss:$16 sps:$4 sm:$0xff]   ;;  %v2336_v63 = vld [vmem:[%s2931_s11 + $0x1e4] ss:$16 sps:$4 sm:$0xff]   ;;  %v2338_v0 = vld [vmem:[%s2931_s11 + $0x1ec] ss:$16 sps:$4 sm:$0xff]  }
  0x97   : > { %v2340_v1 = vld [vmem:[%s2931_s11 + $0x1e0] ss:$16 sps:$4 sm:$0xff]   ;;  %v2341_v2 = vld [vmem:[%s2931_s11 + $0x1e8] ss:$16 sps:$4 sm:$0xff]   ;;  %v2345_v4 = vld [vmem:[#allocation4 + $0x14] ss:$8 sps:$4 sm:$0xff]  }
  0x98   : > { %773 = vmatpush1.bf16.msra.mxu0 %v2280_v24  ;;  %886 = vmatpush1.bf16.msra.mxu1 %v2281_v25  ;;  %v2342_v3 = vld [vmem:[#allocation4] ss:$8 sps:$4 sm:$0xff]   ;;  %v2347_v5 = vld [vmem:[#allocation4 + $0x10] ss:$8 sps:$4 sm:$0xff]   ;;  %v2348_v6 = vld [vmem:[#allocation4 + $0x24] ss:$8 sps:$4 sm:$0xff]  }
  0x99   : > { %774 = vmatprep.subr.bf16.mxu0 %v2282_v26  ;;  %887 = vmatprep.subr.bf16.mxu1 %v2284_v27  ;;  %v2350_v7 = vld [vmem:[#allocation4 + $0x20] ss:$8 sps:$4 sm:$0xff]   ;;  %v2351_v8 = vld [vmem:[#allocation4 + $0x34] ss:$8 sps:$4 sm:$0xff]   ;;  %v2353_v9 = vld [vmem:[#allocation4 + $0x30] ss:$8 sps:$4 sm:$0xff]  }
  0x9a   : > { %v2354_v10 = vld [vmem:[#allocation4 + $0x44] ss:$8 sps:$4 sm:$0xff]   ;;  %v2356_v11 = vld [vmem:[#allocation4 + $0x40] ss:$8 sps:$4 sm:$0xff]   ;;  %v2357_v12 = vld [vmem:[#allocation4 + $0x54] ss:$8 sps:$4 sm:$0xff]  }
  0x9b   : > { %v2359_v13 = vld [vmem:[#allocation4 + $0x50] ss:$8 sps:$4 sm:$0xff]   ;;  %v2360_v14 = vld [vmem:[#allocation4 + $0x64] ss:$8 sps:$4 sm:$0xff]   ;;  %v2362_v15 = vld [vmem:[#allocation4 + $0x60] ss:$8 sps:$4 sm:$0xff]  }
  0x9c   : > { %775 = vmatpush1.bf16.msra.mxu0 %v2286_v28  ;;  %888 = vmatpush1.bf16.msra.mxu1 %v2287_v29  ;;  %v2363_v16 = vld [vmem:[#allocation4 + $0x74] ss:$8 sps:$4 sm:$0xff]   ;;  %v2365_v17 = vld [vmem:[#allocation4 + $0x70] ss:$8 sps:$4 sm:$0xff]   ;;  %vm1548_vm1 = vcmask 7168   ;;  %p2144_p10 = scmp.ne.s32.totalorder %s2726_s15, 3 }
  0x9d   : > { %776 = vmatprep.subr.bf16.mxu0 %v2288_v30  ;;  %889 = vmatprep.subr.bf16.mxu1 %v2290_v31 }
  0xa0   : > { %777 = vmatpush1.bf16.msra.mxu0 %v2292_v32  ;;  %890 = vmatpush1.bf16.msra.mxu1 %v2293_v33 }
  0xa1   : > { %778 = vmatprep.subr.bf16.mxu0 %v2294_v34  ;;  %891 = vmatprep.subr.bf16.mxu1 %v2296_v35 }
  0xa4   : > { %779 = vmatpush1.bf16.msra.mxu0 %v2298_v36  ;;  %892 = vmatpush1.bf16.msra.mxu1 %v2299_v37 }
  0xa5   : > { %780 = vmatprep.subr.bf16.mxu0 %v2300_v38  ;;  %893 = vmatprep.subr.bf16.mxu1 %v2302_v39 }
  0xa8   : > { %781 = vmatpush1.bf16.msra.mxu0 %v2304_v40  ;;  %894 = vmatpush1.bf16.msra.mxu1 %v2305_v41 }
  0xa9   : > { %782 = vmatprep.subr.bf16.mxu0 %v2306_v42  ;;  %895 = vmatprep.subr.bf16.mxu1 %v2308_v43 }
  0xac   : > { %783 = vmatpush1.bf16.msra.mxu0 %v2310_v44  ;;  %896 = vmatpush1.bf16.msra.mxu1 %v2311_v45 }
  0xad   : > { %784 = vmatprep.subr.bf16.mxu0 %v2312_v46  ;;  %897 = vmatprep.subr.bf16.mxu1 %v2314_v47 }
  0xb0   : > { %785 = vmatpush1.bf16.msra.mxu0 %v2316_v48  ;;  %898 = vmatpush1.bf16.msra.mxu1 %v2317_v49 }
  0xb1   : > { %786 = vmatprep.subr.bf16.mxu0 %v2318_v51  ;;  %899 = vmatprep.subr.bf16.mxu1 %v2320_v52 }
  0xb4   : > { %787 = vmatpush1.bf16.msra.mxu0 %v2322_v53  ;;  %900 = vmatpush1.bf16.msra.mxu1 %v2323_v54 }
  0xb5   : > { %788 = vmatprep.subr.bf16.mxu0 %v2324_v55  ;;  %901 = vmatprep.subr.bf16.mxu1 %v2326_v56 }
  0xb8   : > { %789 = vmatpush1.bf16.msra.mxu0 %v2328_v57  ;;  %902 = vmatpush1.bf16.msra.mxu1 %v2329_v58 }
  0xb9   : > { %790 = vmatprep.subr.bf16.mxu0 %v2330_v59  ;;  %903 = vmatprep.subr.bf16.mxu1 %v2332_v60  ;;  %v2746_v59 = vmov 0  }
  0xba   : > { %2244 = vset.pattern.permute.xlu0 %v2746_v59  ;;  %2245 = vset.pattern.permute.xlu1 %v2746_v59 }
  0xbc   : > { %791 = vmatpush1.bf16.msra.mxu0 %v2334_v61  ;;  %904 = vmatpush1.bf16.msra.mxu1 %v2335_v62 }
  0xbd   : > { %792 = vmatprep.subr.bf16.mxu0 %v2336_v63  ;;  %905 = vmatprep.subr.bf16.mxu1 %v2338_v0 }
  0xc0   : > { %793 = vmatpush1.bf16.msra.mxu0 %v2340_v1  ;;  %906 = vmatpush1.bf16.msra.mxu1 %v2341_v2 }
  0xc3   : > { %795 = vmatmul.mubr.bf16.vlgmr.msra.gmra.mrb[0].mxu0 %v2342_v3  ;;  %908 = vmatmul.mubr.bf16.vlgmr.msra.gmra.mrb[0].mxu1 %v2342_v3 }
  0xc4   : > { %804 = vmatprep.mubr.bf16.mxu0 %v2345_v4  ;;  %917 = vmatprep.mubr.bf16.mxu1 %v2345_v4 }
  0xcb   : > { %805 = vmatmul.mubr.bf16.gmra.mrb[4].mxu0 %v2347_v5  ;;  %918 = vmatmul.mubr.bf16.gmra.mrb[4].mxu1 %v2347_v5 }
  0xcc   : > { %814 = vmatprep.mubr.bf16.mxu0 %v2348_v6  ;;  %927 = vmatprep.mubr.bf16.mxu1 %v2348_v6 }
  0xd3   : > { %815 = vmatmul.mubr.bf16.gmra.mrb[8].mxu0 %v2350_v7  ;;  %928 = vmatmul.mubr.bf16.gmra.mrb[8].mxu1 %v2350_v7 }
  0xd4   : > { %824 = vmatprep.mubr.bf16.mxu0 %v2351_v8  ;;  %937 = vmatprep.mubr.bf16.mxu1 %v2351_v8 }
  0xdb   : > { %825 = vmatmul.mubr.bf16.gmra.mrb[12].mxu0 %v2353_v9  ;;  %938 = vmatmul.mubr.bf16.gmra.mrb[12].mxu1 %v2353_v9 }
  0xdc   : > { %834 = vmatprep.mubr.bf16.mxu0 %v2354_v10  ;;  %947 = vmatprep.mubr.bf16.mxu1 %v2354_v10 }
  0xe3   : > { %835 = vmatmul.mubr.bf16.gmra.mrb[16].mxu0 %v2356_v11  ;;  %948 = vmatmul.mubr.bf16.gmra.mrb[16].mxu1 %v2356_v11 }
  0xe4   : > { %844 = vmatprep.mubr.bf16.mxu0 %v2357_v12  ;;  %957 = vmatprep.mubr.bf16.mxu1 %v2357_v12 }
  0xeb   : > { %845 = vmatmul.mubr.bf16.gmra.mrb[20].mxu0 %v2359_v13  ;;  %958 = vmatmul.mubr.bf16.gmra.mrb[20].mxu1 %v2359_v13 }
  0xec   : > { %854 = vmatprep.mubr.bf16.mxu0 %v2360_v14  ;;  %967 = vmatprep.mubr.bf16.mxu1 %v2360_v14 }
  0xf3   : > { %855 = vmatmul.mubr.bf16.gmra.mrb[24].mxu0 %v2362_v15  ;;  %968 = vmatmul.mubr.bf16.gmra.mrb[24].mxu1 %v2362_v15 }
  0xf4   : > { %864 = vmatprep.mubr.bf16.mxu0 %v2363_v16  ;;  %977 = vmatprep.mubr.bf16.mxu1 %v2363_v16 }
  0xfb   : > { %865 = vmatmul.mubr.bf16.gmra.mrb[28].mxu0 %v2365_v17  ;;  %978 = vmatmul.mubr.bf16.gmra.mrb[28].mxu1 %v2365_v17 }
 0x196   : > { %v3038_v18 = vpop.f32.mrb[0].mxu0  ;;  %v3040_v19 = vpop.f32.mrb[0].mxu1 }
 0x197   : > { %v3042_v20 = vpop.f32.mrb[1].mxu0  ;;  %v3044_v21 = vpop.f32.mrb[1].mxu1 }
 0x198   : > { %v1004_v22 = vmax.f32 %v3038_v18, %v3042_v20  ;;  %v3048_v23 = vpop.f32.mrb[2].mxu0  ;;  %v3050_v24 = vpop.f32.mrb[2].mxu1 }
 0x199   : > { %v3052_v25 = vpop.f32.mrb[3].mxu0  ;;  %v3054_v26 = vpop.f32.mrb[3].mxu1 }
 0x19a   : > { %v1009_v27 = vmax.f32 %v3048_v23, %v3052_v25  ;;  %v1005_v28 = vmax.f32 %v1004_v22, %v3040_v19 }
 0x19c   : > { %v1006_v29 = vmax.f32 %v1005_v28, %v3044_v21  ;;  %v1010_v30 = vmax.f32 %v1009_v27, %v3050_v24 }
 0x19e   : > { %v3061_v31 = vpop.f32.mrb[4].mxu1  ;;  %1007 = vmax.xlane.f32.xlu0 %v1006_v29  ;;  %v3063_v32 = vpop.f32.mrb[4].mxu0  ;;  %v1011_v33 = vmax.f32 %v1010_v30, %v3054_v26 }
 0x19f   : > { %v3066_v34 = vpop.f32.mrb[5].mxu0  ;;  %v3068_v35 = vpop.f32.mrb[5].mxu1 }
 0x1a0   : > { %v1014_v36 = vmax.f32 %v3063_v32, %v3066_v34  ;;  %v3072_v37 = vpop.f32.mrb[6].mxu0  ;;  %v3074_v38 = vpop.f32.mrb[6].mxu1 }
 0x1a1   : > { %v3076_v39 = vpop.f32.mrb[7].mxu0  ;;  %v3078_v40 = vpop.f32.mrb[7].mxu1 }
 0x1a2   : > { %v1019_v41 = vmax.f32 %v3072_v37, %v3076_v39  ;;  %1012 = vmax.xlane.f32.xlu0 %v1011_v33  ;;  %v1015_v42 = vmax.f32 %v1014_v36, %v3061_v31 }
 0x1a4   : > { %v1016_v43 = vmax.f32 %v1015_v42, %v3068_v35  ;;  %v1020_v44 = vmax.f32 %v1019_v41, %v3074_v38 }
 0x1a6   : > { %v3085_v45 = vpop.f32.mrb[8].mxu1  ;;  %1017 = vmax.xlane.f32.xlu1 %v1016_v43  ;;  %v3087_v46 = vpop.f32.mrb[8].mxu0  ;;  %v1021_v47 = vmax.f32 %v1020_v44, %v3078_v40 }
 0x1a7   : > { %v3090_v48 = vpop.f32.mrb[9].mxu0  ;;  %v3092_v49 = vpop.f32.mrb[9].mxu1 }
 0x1a8   : > { %v1024_v50 = vmax.f32 %v3087_v46, %v3090_v48  ;;  %v3096_v51 = vpop.f32.mrb[10].mxu0  ;;  %v3098_v52 = vpop.f32.mrb[10].mxu1 }
 0x1a9   : > { %v3100_v53 = vpop.f32.mrb[11].mxu0  ;;  %v3102_v54 = vpop.f32.mrb[11].mxu1 }
 0x1aa   : > { %v1029_v55 = vmax.f32 %v3096_v51, %v3100_v53  ;;  %1022 = vmax.xlane.f32.xlu1 %v1021_v47  ;;  %v1025_v56 = vmax.f32 %v1024_v50, %v3085_v45 }
 0x1ac   : > { %v1026_v57 = vmax.f32 %v1025_v56, %v3092_v49  ;;  %v1030_v58 = vmax.f32 %v1029_v55, %v3098_v52 }
 0x1ae   : > { %v3109_v60 = vpop.f32.mrb[12].mxu1  ;;  %1027 = vmax.xlane.f32.xlu0 %v1026_v57  ;;  %v3111_v61 = vpop.f32.mrb[12].mxu0  ;;  %v1031_v62 = vmax.f32 %v1030_v58, %v3102_v54 }
 0x1af   : > { %v3114_v63 = vpop.f32.mrb[13].mxu0  ;;  %v3116_v0 = vpop.f32.mrb[13].mxu1 }
 0x1b0   : > { %v1034_v1 = vmax.f32 %v3111_v61, %v3114_v63  ;;  %v3120_v2 = vpop.f32.mrb[14].mxu1  ;;  %1032 = vmax.xlane.f32.xlu1 %v1031_v62  ;;  %v3122_v3 = vpop.f32.mrb[14].mxu0 }
 0x1b1   : > { %v3124_v4 = vpop.f32.mrb[15].mxu0  ;;  %v3126_v5 = vpop.f32.mrb[15].mxu1 }
 0x1b2   : > { %v1039_v6 = vmax.f32 %v3122_v3, %v3124_v4  ;;  %v1035_v7 = vmax.f32 %v1034_v1, %v3109_v60 }
 0x1b4   : > { %v1036_v8 = vmax.f32 %v1035_v7, %v3116_v0  ;;  %v1040_v9 = vmax.f32 %v1039_v6, %v3120_v2 }
 0x1b6   : > { %v3133_v10 = vpop.f32.mrb[16].mxu1  ;;  %1037 = vmax.xlane.f32.xlu0 %v1036_v8  ;;  %v3135_v11 = vpop.f32.mrb[16].mxu0  ;;  %v1041_v12 = vmax.f32 %v1040_v9, %v3126_v5 }
 0x1b7   : > { %v3138_v13 = vpop.f32.mrb[17].mxu0  ;;  %v3140_v14 = vpop.f32.mrb[17].mxu1 }
 0x1b8   : > { %v1044_v15 = vmax.f32 %v3135_v11, %v3138_v13  ;;  %v3144_v16 = vpop.f32.mrb[18].mxu1  ;;  %1042 = vmax.xlane.f32.xlu1 %v1041_v12  ;;  %v3146_v17 = vpop.f32.mrb[18].mxu0 }
 0x1b9   : > { %v3148_v22 = vpop.f32.mrb[19].mxu0  ;;  %v3150_v27 = vpop.f32.mrb[19].mxu1 }
 0x1ba   : > { %v1049_v28 = vmax.f32 %v3146_v17, %v3148_v22  ;;  %v1045_v29 = vmax.f32 %v1044_v15, %v3133_v10 }
 0x1bc   : > { %v1046_v30 = vmax.f32 %v1045_v29, %v3140_v14  ;;  %v1050_v33 = vmax.f32 %v1049_v28, %v3144_v16 }
 0x1be   : > { %v3157_v36 = vpop.f32.mrb[20].mxu1  ;;  %1047 = vmax.xlane.f32.xlu0 %v1046_v30  ;;  %v3159_v41 = vpop.f32.mrb[20].mxu0  ;;  %v1051_v42 = vmax.f32 %v1050_v33, %v3150_v27 }
 0x1bf   : > { %v3162_v43 = vpop.f32.mrb[21].mxu0  ;;  %v3164_v44 = vpop.f32.mrb[21].mxu1 }
 0x1c0   : > { %v1054_v47 = vmax.f32 %v3159_v41, %v3162_v43  ;;  %v3168_v50 = vpop.f32.mrb[22].mxu1  ;;  %1052 = vmax.xlane.f32.xlu1 %v1051_v42  ;;  %v3170_v55 = vpop.f32.mrb[22].mxu0 }
 0x1c1   : > { %v3172_v56 = vpop.f32.mrb[23].mxu0  ;;  %v3174_v57 = vpop.f32.mrb[23].mxu1 }
 0x1c2   : > { %v1059_v58 = vmax.f32 %v3170_v55, %v3172_v56  ;;  %v1055_v59 = vmax.f32 %v1054_v47, %v3157_v36 }
 0x1c4   : > { %v1056_v62 = vmax.f32 %v1055_v59, %v3164_v44  ;;  %v1060_v1 = vmax.f32 %v1059_v58, %v3168_v50 }
 0x1c6   : > { %v3181_v6 = vpop.f32.mrb[24].mxu1  ;;  %1057 = vmax.xlane.f32.xlu0 %v1056_v62  ;;  %v3183_v7 = vpop.f32.mrb[24].mxu0  ;;  %v1061_v8 = vmax.f32 %v1060_v1, %v3174_v57 }
 0x1c7   : > { %3625 = vst [vmem:[#allocation15_spill] sm:$0xff] %v3181_v6  ;;  %3626 = vst [vmem:[#allocation16_spill] sm:$0xff] %v3183_v7  ;;  %v3186_v9 = vpop.f32.mrb[25].mxu0  ;;  %v3188_v12 = vpop.f32.mrb[25].mxu1 }
 0x1c8   : > { %3627 = vst [vmem:[#allocation17_spill] sm:$0xff] %v3186_v9  ;;  %3628 = vst [vmem:[#allocation18_spill] sm:$0xff] %v3188_v12  ;;  %v1064_v15 = vmax.f32 %v3183_v7, %v3186_v9  ;;  %v3192_v28 = vpop.f32.mrb[26].mxu1  ;;  %1062 = vmax.xlane.f32.xlu1 %v1061_v8  ;;  %v3194_v29 = vpop.f32.mrb[26].mxu0 }
 0x1c9   : > { %3629 = vst [vmem:[#allocation19_spill] sm:$0xff] %v3192_v28  ;;  %3630 = vst [vmem:[#allocation20_spill] sm:$0xff] %v3194_v29  ;;  %v3196_v30 = vpop.f32.mrb[27].mxu0  ;;  %v3198_v33 = vpop.f32.mrb[27].mxu1 }
 0x1ca   : > { %3631 = vst [vmem:[#allocation21_spill] sm:$0xff] %v3196_v30  ;;  %3632 = vst [vmem:[#allocation22_spill] sm:$0xff] %v3198_v33  ;;  %v1069_v42 = vmax.f32 %v3194_v29, %v3196_v30  ;;  %v1065_v47 = vmax.f32 %v1064_v15, %v3181_v6  ;;  %v3235_v6 = vld [vmem:[#allocation2 + $0x8] sm:$0xff] }
 0x1cb   : > { %3641 = vst [vmem:[#allocation31_spill] sm:$0xff] %v3235_v6 }
 0x1cc   : > { %v1066_v58 = vmax.f32 %v1065_v47, %v3188_v12  ;;  %v1070_v59 = vmax.f32 %v1069_v42, %v3192_v28 }
 0x1ce   : > { %v3205_v62 = vpop.f32.mrb[28].mxu1  ;;  %1067 = vmax.xlane.f32.xlu0 %v1066_v58  ;;  %v3207_v1 = vpop.f32.mrb[28].mxu0  ;;  %v1071_v8 = vmax.f32 %v1070_v59, %v3198_v33 }
 0x1cf   : > { %3633 = vst [vmem:[#allocation23_spill] sm:$0xff] %v3207_v1  ;;  %v3210_v9 = vpop.f32.mrb[29].mxu0  ;;  %v3212_v7 = vpop.f32.mrb[29].mxu1 }
 0x1d0   : > { %3634 = vst [vmem:[#allocation24_spill] sm:$0xff] %v3210_v9  ;;  %v1074_v30 = vmax.f32 %v3207_v1, %v3210_v9  ;;  %v3216_v29 = vpop.f32.mrb[30].mxu1  ;;  %1072 = vmax.xlane.f32.xlu1 %v1071_v8  ;;  %v3218_v15 = vpop.f32.mrb[30].mxu0  ;;  %v3230_v8 = vld [vmem:[#allocation2] sm:$0xff] }
 0x1d1   : > { %3635 = vst [vmem:[#allocation25_spill] sm:$0xff] %v3216_v29  ;;  %3636 = vst [vmem:[#allocation26_spill] sm:$0xff] %v3218_v15  ;;  %v3220_v42 = vpop.f32.mrb[31].mxu0  ;;  %v3222_v47 = vpop.f32.mrb[31].mxu1 }
 0x1d2   : > { %3637 = vst [vmem:[#allocation27_spill] sm:$0xff] %v3220_v42  ;;  %3638 = vst [vmem:[#allocation28_spill] sm:$0xff] %v3222_v47  ;;  %v1079_v58 = vmax.f32 %v3218_v15, %v3220_v42  ;;  %v1075_v59 = vmax.f32 %v1074_v30, %v3205_v62  ;;  %v3255_v30 = vld [vmem:[#allocation2 + $0x18] sm:$0xff] }
 0x1d3   : > { %3639 = vst [vmem:[#allocation29_spill] sm:$0xff] %v3230_v8  ;;  %3645 = vst [vmem:[#allocation35_spill] sm:$0xff] %v3255_v30 }
 0x1d4   : > { %v1080_v33 = vmax.f32 %v1079_v58, %v3216_v29  ;;  %v1076_v28 = vmax.f32 %v1075_v59, %v3212_v7 }
 0x1d6   : > { %v1081_v9 = vmax.f32 %v1080_v33, %v3222_v47  ;;  %1077 = vmax.xlane.f32.xlu0 %v1076_v28  ;;  %v3245_v28 = vld [vmem:[#allocation2 + $0x10] sm:$0xff] }
 0x1d7   : > { %3643 = vst [vmem:[#allocation33_spill] sm:$0xff] %v3245_v28 }
 0x1d8   : > { %1082 = vmax.xlane.f32.xlu1 %v1081_v9 }
 0x22b   : > { %v1008_v1 = vpop.xlane.xlu0 %1007 }
 0x22c   : > { %v3233_v12 = vmax.f32 %v3230_v8, %v1008_v1 }
 0x22e   : > { %3640 = vst [vmem:[#allocation30_spill] sm:$0xff] %v3233_v12  ;;  %1565 = vst.msk [vmem:[#allocation2] sm:$0xff] %vm1548_vm1, %v3233_v12  ;;  %1182 = vperm.xlu0 %2244, %v3233_v12   ;;  %v3265_v12 = vld [vmem:[#allocation2 + $0x20] sm:$0xff] }
 0x22f   : > { %v1013_v33 = vpop.xlane.xlu0 %1012  ;;  %3647 = vst [vmem:[#allocation37_spill] sm:$0xff] %v3265_v12 }
 0x230   : > { %v3243_v9 = vmax.f32 %v3235_v6, %v1013_v33 }
 0x232   : > { %3642 = vst [vmem:[#allocation32_spill] sm:$0xff] %v3243_v9  ;;  %1566 = vst.msk [vmem:[#allocation2 + $0x8] sm:$0xff] %vm1548_vm1, %v3243_v9  ;;  %1187 = vperm.xlu1 %2245, %v3243_v9  }
 0x233   : > { %v1018_v58 = vpop.xlane.xlu1 %1017 }
 0x234   : > { %v3253_v59 = vmax.f32 %v3245_v28, %v1018_v58  ;;  %v3272_v28 = vld [vmem:[#allocation2 + $0x28] sm:$0xff] }
 0x235   : > { %3648 = vst [vmem:[#allocation38_spill] sm:$0xff] %v3272_v28 }
 0x236   : > { %3644 = vst [vmem:[#allocation34_spill] sm:$0xff] %v3253_v59  ;;  %1567 = vst.msk [vmem:[#allocation2 + $0x10] sm:$0xff] %vm1548_vm1, %v3253_v59  ;;  %1192 = vperm.xlu1 %2245, %v3253_v59  }
 0x237   : > { %v1023_v1 = vpop.xlane.xlu1 %1022 }
 0x238   : > { %v3263_v6 = vmax.f32 %v3255_v30, %v1023_v1  ;;  %v3292_v1 = vld [vmem:[#allocation2 + $0x38] sm:$0xff] }
 0x239   : > { %3652 = vst [vmem:[#allocation42_spill] sm:$0xff] %v3292_v1 }
 0x23a   : > { %3646 = vst [vmem:[#allocation36_spill] sm:$0xff] %v3263_v6  ;;  %1568 = vst.msk [vmem:[#allocation2 + $0x18] sm:$0xff] %vm1548_vm1, %v3263_v6  ;;  %1197 = vperm.xlu1 %2245, %v3263_v6  }
 0x23b   : > { %v1028_v33 = vpop.xlane.xlu0 %1027 }
 0x23c   : > { %v3275_v9 = vmax.f32 %v3265_v12, %v1028_v33  ;;  %v3289_v33 = vld [vmem:[#allocation2 + $0x30] sm:$0xff] }
 0x23d   : > { %v1033_v59 = vpop.xlane.xlu1 %1032  ;;  %3651 = vst [vmem:[#allocation41_spill] sm:$0xff] %v3289_v33 }
 0x23e   : > { %3649 = vst [vmem:[#allocation39_spill] sm:$0xff] %v3275_v9  ;;  %1569 = vst.msk [vmem:[#allocation2 + $0x20] sm:$0xff] %vm1548_vm1, %v3275_v9  ;;  %v3282_v58 = vmax.f32 %v3272_v28, %v1033_v59  ;;  %1202 = vperm.xlu1 %2245, %v3275_v9   ;;  %v3312_v9 = vld [vmem:[#allocation2 + $0x48] sm:$0xff] }
 0x23f   : > { %3656 = vst [vmem:[#allocation46_spill] sm:$0xff] %v3312_v9 }
 0x240   : > { %3650 = vst [vmem:[#allocation40_spill] sm:$0xff] %v3282_v58  ;;  %1570 = vst.msk [vmem:[#allocation2 + $0x28] sm:$0xff] %vm1548_vm1, %v3282_v58 }
 0x242   : > { %1207 = vperm.xlu1 %2245, %v3282_v58  }
 0x243   : > { %v1038_v30 = vpop.xlane.xlu0 %1037 }
 0x244   : > { %v3295_v12 = vmax.f32 %v3289_v33, %v1038_v30  ;;  %v3309_v30 = vld [vmem:[#allocation2 + $0x40] sm:$0xff] }
 0x245   : > { %v1043_v59 = vpop.xlane.xlu1 %1042  ;;  %3655 = vst [vmem:[#allocation45_spill] sm:$0xff] %v3309_v30 }
 0x246   : > { %3653 = vst [vmem:[#allocation43_spill] sm:$0xff] %v3295_v12  ;;  %1571 = vst.msk [vmem:[#allocation2 + $0x30] sm:$0xff] %vm1548_vm1, %v3295_v12  ;;  %v3302_v6 = vmax.f32 %v3292_v1, %v1043_v59  ;;  %1212 = vperm.xlu1 %2245, %v3295_v12   ;;  %v3332_v12 = vld [vmem:[#allocation2 + $0x58] sm:$0xff] }
 0x247   : > { %3660 = vst [vmem:[#allocation50_spill] sm:$0xff] %v3332_v12 }
 0x248   : > { %3654 = vst [vmem:[#allocation44_spill] sm:$0xff] %v3302_v6  ;;  %1572 = vst.msk [vmem:[#allocation2 + $0x38] sm:$0xff] %vm1548_vm1, %v3302_v6 }
 0x24a   : > { %1217 = vperm.xlu1 %2245, %v3302_v6  }
 0x24b   : > { %v1048_v28 = vpop.xlane.xlu0 %1047 }
 0x24c   : > { %v3315_v33 = vmax.f32 %v3309_v30, %v1048_v28  ;;  %v3330_v28 = vld [vmem:[#allocation2 + $0x50] sm:$0xff] }
 0x24d   : > { %v1053_v59 = vpop.xlane.xlu1 %1052  ;;  %3659 = vst [vmem:[#allocation49_spill] sm:$0xff] %v3330_v28 }
 0x24e   : > { %3657 = vst [vmem:[#allocation47_spill] sm:$0xff] %v3315_v33  ;;  %1573 = vst.msk [vmem:[#allocation2 + $0x40] sm:$0xff] %vm1548_vm1, %v3315_v33  ;;  %v3322_v58 = vmax.f32 %v3312_v9, %v1053_v59  ;;  %1222 = vperm.xlu1 %2245, %v3315_v33   ;;  %v3352_v33 = vld [vmem:[#allocation2 + $0x68] sm:$0xff] }
 0x24f   : > { %3664 = vst [vmem:[#allocation54_spill] sm:$0xff] %v3352_v33 }
 0x250   : > { %3658 = vst [vmem:[#allocation48_spill] sm:$0xff] %v3322_v58  ;;  %1574 = vst.msk [vmem:[#allocation2 + $0x48] sm:$0xff] %vm1548_vm1, %v3322_v58  ;;  %1227 = vperm.xlu0 %2244, %v3322_v58  }
 0x253   : > { %v1058_v1 = vpop.xlane.xlu0 %1057 }
 0x254   : > { %v3335_v30 = vmax.f32 %v3330_v28, %v1058_v1  ;;  %v3350_v1 = vld [vmem:[#allocation2 + $0x60] sm:$0xff] }
 0x255   : > { %v1063_v59 = vpop.xlane.xlu1 %1062  ;;  %3663 = vst [vmem:[#allocation53_spill] sm:$0xff] %v3350_v1 }
 0x256   : > { %3661 = vst [vmem:[#allocation51_spill] sm:$0xff] %v3335_v30  ;;  %1575 = vst.msk [vmem:[#allocation2 + $0x50] sm:$0xff] %vm1548_vm1, %v3335_v30  ;;  %v3342_v6 = vmax.f32 %v3332_v12, %v1063_v59  ;;  %1232 = vperm.xlu1 %2245, %v3335_v30   ;;  %v3372_v30 = vld [vmem:[#allocation2 + $0x78] sm:$0xff] }
 0x257   : > { %3668 = vst [vmem:[#allocation58_spill] sm:$0xff] %v3372_v30 }
 0x258   : > { %3662 = vst [vmem:[#allocation52_spill] sm:$0xff] %v3342_v6  ;;  %1576 = vst.msk [vmem:[#allocation2 + $0x58] sm:$0xff] %vm1548_vm1, %v3342_v6  ;;  %1237 = vperm.xlu0 %2244, %v3342_v6  }
 0x25b   : > { %v1068_v9 = vpop.xlane.xlu0 %1067 }
 0x25c   : > { %v3355_v28 = vmax.f32 %v3350_v1, %v1068_v9  ;;  %v3370_v9 = vld [vmem:[#allocation2 + $0x70] sm:$0xff] }
 0x25d   : > { %v1073_v59 = vpop.xlane.xlu1 %1072  ;;  %3667 = vst [vmem:[#allocation57_spill] sm:$0xff] %v3370_v9 }
 0x25e   : > { %3665 = vst [vmem:[#allocation55_spill] sm:$0xff] %v3355_v28  ;;  %1577 = vst.msk [vmem:[#allocation2 + $0x60] sm:$0xff] %vm1548_vm1, %v3355_v28  ;;  %v3362_v58 = vmax.f32 %v3352_v33, %v1073_v59  ;;  %1242 = vperm.xlu1 %2245, %v3355_v28  }
 0x260   : > { %3666 = vst [vmem:[#allocation56_spill] sm:$0xff] %v3362_v58  ;;  %1578 = vst.msk [vmem:[#allocation2 + $0x68] sm:$0xff] %vm1548_vm1, %v3362_v58  ;;  %1247 = vperm.xlu0 %2244, %v3362_v58  }
 0x263   : > { %v1078_v12 = vpop.xlane.xlu0 %1077 }
 0x264   : > { %v3375_v1 = vmax.f32 %v3370_v9, %v1078_v12 }
 0x265   : > { %v1083_v59 = vpop.xlane.xlu1 %1082 }
 0x266   : > { %3669 = vst [vmem:[#allocation59_spill] sm:$0xff] %v3375_v1  ;;  %1579 = vst.msk [vmem:[#allocation2 + $0x70] sm:$0xff] %vm1548_vm1, %v3375_v1  ;;  %v3382_v6 = vmax.f32 %v3372_v30, %v1083_v59  ;;  %1252 = vperm.xlu1 %2245, %v3375_v1  }
 0x268   : > { %3670 = vst [vmem:[#allocation60_spill] sm:$0xff] %v3382_v6  ;;  %1580 = vst.msk [vmem:[#allocation2 + $0x78] sm:$0xff] %vm1548_vm1, %v3382_v6  ;;  %1257 = vperm.xlu0 %2244, %v3382_v6  }
 0x2ad   : > { %v1183_v12 = vpop.permute.xlu0 %1182 }
 0x2ae   : > { %v1260_v33 = vsub.f32 %v3038_v18, %v1183_v12  ;;  %v1261_v28 = vsub.f32 %v3042_v20, %v1183_v12  ;;  %v1262_v9 = vsub.f32 %v3040_v19, %v1183_v12  ;;  %v1263_v59 = vsub.f32 %v3044_v21, %v1183_v12 }
 0x2b0   : > { %v1324_v8 = vmul.f32 1.442695, %v1260_v33  ;;  %v1326_v47 = vmul.f32 1.442695, %v1261_v28  ;;  %v1328_v1 = vmul.f32 1.442695, %v1262_v9 }
 0x2b1   : > { %v1330_v29 = vmul.f32 1.442695, %v1263_v59  ;;  %v1188_v42 = vpop.permute.xlu1 %1187 }
 0x2b2   : > { %2366 = vpow2.f32 %v1324_v8  ;;  %v1264_v58 = vsub.f32 %v3048_v23, %v1188_v42  ;;  %v1265_v30 = vsub.f32 %v3052_v25, %v1188_v42  ;;  %v1266_v6 = vsub.f32 %v3050_v24, %v1188_v42 }
 0x2b3   : > { %2368 = vpow2.f32 %v1326_v47  ;;  %v1267_v18 = vsub.f32 %v3054_v26, %v1188_v42 }
 0x2b4   : > { %2370 = vpow2.f32 %v1328_v1  ;;  %v1332_v20 = vmul.f32 1.442695, %v1264_v58  ;;  %v1334_v19 = vmul.f32 1.442695, %v1265_v30  ;;  %v1336_v15 = vmul.f32 1.442695, %v1266_v6 }
 0x2b5   : > { %2372 = vpow2.f32 %v1330_v29  ;;  %v1338_v21 = vmul.f32 1.442695, %v1267_v18  ;;  %v1193_v33 = vpop.permute.xlu1 %1192 }
 0x2b6   : > { %2374 = vpow2.f32 %v1332_v20  ;;  %v1268_v28 = vsub.f32 %v3063_v32, %v1193_v33  ;;  %v1269_v8 = vsub.f32 %v3066_v34, %v1193_v33  ;;  %v1270_v23 = vsub.f32 %v3061_v31, %v1193_v33 }
 0x2b7   : > { %2376 = vpow2.f32 %v1334_v19  ;;  %v1271_v24 = vsub.f32 %v3068_v35, %v1193_v33 }
 0x2b8   : > { %2378 = vpow2.f32 %v1336_v15  ;;  %v1340_v25 = vmul.f32 1.442695, %v1268_v28  ;;  %v1342_v26 = vmul.f32 1.442695, %v1269_v8  ;;  %v1344_v42 = vmul.f32 1.442695, %v1270_v23 }
 0x2b9   : > { %2380 = vpow2.f32 %v1338_v21  ;;  %v1346_v47 = vmul.f32 1.442695, %v1271_v24  ;;  %v1198_v6 = vpop.permute.xlu1 %1197 }
 0x2ba   : > { %2382 = vpow2.f32 %v1340_v25  ;;  %v1272_v29 = vsub.f32 %v3072_v37, %v1198_v6  ;;  %v1273_v58 = vsub.f32 %v3076_v39, %v1198_v6  ;;  %v1274_v32 = vsub.f32 %v3074_v38, %v1198_v6 }
 0x2bb   : > { %2384 = vpow2.f32 %v1342_v26  ;;  %v1275_v31 = vsub.f32 %v3078_v40, %v1198_v6 }
 0x2bc   : > { %v2367_v34 = vpop.eup %2366  ;;  %2386 = vpow2.f32 %v1344_v42  ;;  %v1348_v35 = vmul.f32 1.442695, %v1272_v29  ;;  %v1350_v15 = vmul.f32 1.442695, %v1273_v58  ;;  %v1352_v30 = vmul.f32 1.442695, %v1274_v32 }
 0x2bd   : > { %v2369_v1 = vpop.eup %2368  ;;  %2388 = vpow2.f32 %v1346_v47  ;;  %v1354_v9 = vmul.f32 1.442695, %v1275_v31  ;;  %v1203_v12 = vpop.permute.xlu1 %1202 }
 0x2be   : > { %v2371_v59 = vpop.eup %2370  ;;  %2390 = vpow2.f32 %v1348_v35  ;;  %v1276_v37 = vsub.f32 %v3087_v46, %v1203_v12  ;;  %v1277_v39 = vsub.f32 %v3090_v48, %v1203_v12  ;;  %v1278_v38 = vsub.f32 %v3085_v45, %v1203_v12 }
 0x2bf   : > { %v2373_v18 = vpop.eup %2372  ;;  %2392 = vpow2.f32 %v1350_v15  ;;  %v1279_v40 = vsub.f32 %v3092_v49, %v1203_v12  ;;  %v1452_v20 = vadd.f32 %v2369_v1, %v2367_v34 }
 0x2c0   : > { %v2375_v19 = vpop.eup %2374  ;;  %2394 = vpow2.f32 %v1352_v30  ;;  %v1356_v21 = vmul.f32 1.442695, %v1276_v37  ;;  %v1358_v33 = vmul.f32 1.442695, %v1277_v39  ;;  %v1360_v28 = vmul.f32 1.442695, %v1278_v38 }
 0x2c1   : > { %v2377_v8 = vpop.eup %2376  ;;  %2396 = vpow2.f32 %v1354_v9  ;;  %v1362_v23 = vmul.f32 1.442695, %v1279_v40  ;;  %v1208_v24 = vpop.permute.xlu1 %1207  ;;  %v1453_v25 = vadd.f32 %v2371_v59, %v1452_v20 }
 0x2c2   : > { %v2379_v46 = vpop.eup %2378  ;;  %2398 = vpow2.f32 %v1356_v21  ;;  %v1280_v48 = vsub.f32 %v3096_v51, %v1208_v24  ;;  %v1281_v45 = vsub.f32 %v3100_v53, %v1208_v24  ;;  %v1282_v26 = vsub.f32 %v3098_v52, %v1208_v24 }
 0x2c3   : > { %v2381_v49 = vpop.eup %2380  ;;  %2400 = vpow2.f32 %v1358_v33  ;;  %v1283_v42 = vsub.f32 %v3102_v54, %v1208_v24  ;;  %v1454_v47 = vadd.f32 %v2373_v18, %v1453_v25  ;;  %v1457_v6 = vadd.f32 %v2377_v8, %v2375_v19 }
 0x2c4   : > { %v2383_v29 = vpop.eup %2382  ;;  %2402 = vpow2.f32 %v1360_v28  ;;  %v1364_v58 = vmul.f32 1.442695, %v1280_v48  ;;  %v1366_v32 = vmul.f32 1.442695, %v1281_v45  ;;  %v1368_v31 = vmul.f32 1.442695, %v1282_v26 }
 0x2c5   : > { %v2385_v34 = vpop.eup %2384  ;;  %2404 = vpow2.f32 %v1362_v23  ;;  %v1370_v35 = vmul.f32 1.442695, %v1283_v42  ;;  %1455 = vadd.xlane.f32.xlu1 %v1454_v47  ;;  %v1213_v51 = vpop.permute.xlu1 %1212  ;;  %v1458_v15 = vadd.f32 %v2379_v46, %v1457_v6 }
 0x2c6   : > { %v2387_v53 = vpop.eup %2386  ;;  %2406 = vpow2.f32 %v1364_v58  ;;  %v1284_v52 = vsub.f32 %v3111_v61, %v1213_v51  ;;  %v1285_v30 = vsub.f32 %v3114_v63, %v1213_v51  ;;  %v1286_v54 = vsub.f32 %v3109_v60, %v1213_v51 }
 0x2c7   : > { %v2389_v1 = vpop.eup %2388  ;;  %2408 = vpow2.f32 %v1366_v32  ;;  %v1287_v9 = vsub.f32 %v3116_v0, %v1213_v51  ;;  %v1459_v12 = vadd.f32 %v2381_v49, %v1458_v15  ;;  %v1462_v59 = vadd.f32 %v2385_v34, %v2383_v29 }
 0x2c8   : > { %v2391_v37 = vpop.eup %2390  ;;  %2410 = vpow2.f32 %v1368_v31  ;;  %v1372_v39 = vmul.f32 1.442695, %v1284_v52  ;;  %v1374_v38 = vmul.f32 1.442695, %v1285_v30  ;;  %v1376_v18 = vmul.f32 1.442695, %v1286_v54 }
 0x2c9   : > { %v2393_v40 = vpop.eup %2392  ;;  %2412 = vpow2.f32 %v1370_v35  ;;  %v1378_v20 = vmul.f32 1.442695, %v1287_v9  ;;  %1460 = vadd.xlane.f32.xlu0 %v1459_v12  ;;  %v1218_v61 = vpop.permute.xlu1 %1217  ;;  %v1463_v19 = vadd.f32 %v2387_v53, %v1462_v59 }
 0x2ca   : > { %v2395_v63 = vpop.eup %2394  ;;  %2414 = vpow2.f32 %v1372_v39  ;;  %v1288_v60 = vsub.f32 %v3122_v3, %v1218_v61  ;;  %v1289_v21 = vsub.f32 %v3124_v4, %v1218_v61  ;;  %v1290_v0 = vsub.f32 %v3120_v2, %v1218_v61 }
 0x2cb   : > { %v2397_v33 = vpop.eup %2396  ;;  %2416 = vpow2.f32 %v1374_v38  ;;  %v1291_v28 = vsub.f32 %v3126_v5, %v1218_v61  ;;  %v1464_v8 = vadd.f32 %v2389_v1, %v1463_v19  ;;  %v1467_v23 = vadd.f32 %v2393_v40, %v2391_v37 }
 0x2cc   : > { %v2399_v24 = vpop.eup %2398  ;;  %2418 = vpow2.f32 %v1376_v18  ;;  %v1380_v25 = vmul.f32 1.442695, %v1288_v60  ;;  %v1382_v46 = vmul.f32 1.442695, %v1289_v21  ;;  %v1384_v48 = vmul.f32 1.442695, %v1290_v0 }
 0x2cd   : > { %v2401_v45 = vpop.eup %2400  ;;  %2420 = vpow2.f32 %v1378_v20  ;;  %v1386_v26 = vmul.f32 1.442695, %v1291_v28  ;;  %1465 = vadd.xlane.f32.xlu0 %v1464_v8  ;;  %v1223_v3 = vpop.permute.xlu1 %1222  ;;  %v1468_v49 = vadd.f32 %v2395_v63, %v1467_v23 }
 0x2ce   : > { %v2403_v4 = vpop.eup %2402  ;;  %2422 = vpow2.f32 %v1380_v25  ;;  %v1292_v2 = vsub.f32 %v3135_v11, %v1223_v3  ;;  %v1293_v42 = vsub.f32 %v3138_v13, %v1223_v3  ;;  %v1294_v5 = vsub.f32 %v3133_v10, %v1223_v3 }
 0x2cf   : > { %v2405_v47 = vpop.eup %2404  ;;  %2424 = vpow2.f32 %v1382_v46  ;;  %v1295_v6 = vsub.f32 %v3140_v14, %v1223_v3  ;;  %v1228_v29 = vpop.permute.xlu0 %1227  ;;  %v1469_v58 = vadd.f32 %v2397_v33, %v1468_v49  ;;  %v1472_v32 = vadd.f32 %v2401_v45, %v2399_v24 }
 0x2d0   : > { %v2407_v31 = vpop.eup %2406  ;;  %2426 = vpow2.f32 %v1384_v48  ;;  %v1388_v34 = vmul.f32 1.442695, %v1292_v2  ;;  %v1390_v35 = vmul.f32 1.442695, %v1293_v42  ;;  %v1392_v51 = vmul.f32 1.442695, %v1294_v5 }
 0x2d1   : > { %v2409_v15 = vpop.eup %2408  ;;  %2428 = vpow2.f32 %v1386_v26  ;;  %v1394_v53 = vmul.f32 1.442695, %v1295_v6  ;;  %v1296_v11 = vsub.f32 %v3146_v17, %v1228_v29  ;;  %v1297_v13 = vsub.f32 %v3148_v22, %v1228_v29  ;;  %1470 = vadd.xlane.f32.xlu1 %v1469_v58  ;;  %v3672_v6 = vld [vmem:[#allocation17_spill] sm:$0xff]  ;;  %v3673_v58 = vld [vmem:[#allocation15_spill] sm:$0xff] }
 0x2d2   : > { %v2411_v10 = vpop.eup %2410  ;;  %2430 = vpow2.f32 %v1388_v34  ;;  %v1298_v14 = vsub.f32 %v3144_v16, %v1228_v29  ;;  %v1299_v52 = vsub.f32 %v3150_v27, %v1228_v29  ;;  %v1473_v30 = vadd.f32 %v2403_v4, %v1472_v32  ;;  %v3674_v34 = vld [vmem:[#allocation18_spill] sm:$0xff] }
 0x2d3   : > { %v2413_v54 = vpop.eup %2412  ;;  %2432 = vpow2.f32 %v1390_v35  ;;  %v1396_v1 = vmul.f32 1.442695, %v1296_v11  ;;  %v1398_v9 = vmul.f32 1.442695, %v1297_v13  ;;  %v1477_v12 = vadd.f32 %v2409_v15, %v2407_v31 }
 0x2d4   : > { %v2415_v59 = vpop.eup %2414  ;;  %2434 = vpow2.f32 %v1392_v51  ;;  %v1400_v37 = vmul.f32 1.442695, %v1298_v14  ;;  %v1474_v39 = vadd.f32 %v2405_v47, %v1473_v30  ;;  %v1402_v22 = vmul.f32 1.442695, %v1299_v52 }
 0x2d5   : > { %v2417_v17 = vpop.eup %2416  ;;  %2436 = vpow2.f32 %v1394_v53  ;;  %v1233_v38 = vpop.permute.xlu1 %1232  ;;  %v1478_v18 = vadd.f32 %v2411_v10, %v1477_v12 }
 0x2d6   : > { %v2419_v40 = vpop.eup %2418  ;;  %2438 = vpow2.f32 %v1396_v1  ;;  %1475 = vadd.xlane.f32.xlu0 %v1474_v39  ;;  %v1300_v16 = vsub.f32 %v3159_v41, %v1233_v38  ;;  %v1301_v27 = vsub.f32 %v3162_v43, %v1233_v38  ;;  %v1302_v20 = vsub.f32 %v3157_v36, %v1233_v38 }
 0x2d7   : > { %v2421_v61 = vpop.eup %2420  ;;  %2440 = vpow2.f32 %v1398_v9  ;;  %v1303_v19 = vsub.f32 %v3164_v44, %v1233_v38  ;;  %v1238_v63 = vpop.permute.xlu0 %1237  ;;  %v1479_v60 = vadd.f32 %v2413_v54, %v1478_v18  ;;  %v1482_v21 = vadd.f32 %v2417_v17, %v2415_v59  ;;  %v3675_v54 = vld [vmem:[#allocation20_spill] sm:$0xff]  ;;  %v3676_v9 = vld [vmem:[#allocation21_spill] sm:$0xff]  ;;  %v3678_v17 = vld [vmem:[#allocation22_spill] sm:$0xff] }
 0x2d8   : > { %v2423_v0 = vpop.eup %2422  ;;  %2442 = vpow2.f32 %v1400_v37  ;;  %v1404_v33 = vmul.f32 1.442695, %v1300_v16  ;;  %v1406_v28 = vmul.f32 1.442695, %v1301_v27  ;;  %v1408_v8 = vmul.f32 1.442695, %v1302_v20 }
 0x2d9   : > { %v2425_v23 = vpop.eup %2424  ;;  %2444 = vpow2.f32 %v1402_v22  ;;  %v1410_v24 = vmul.f32 1.442695, %v1303_v19  ;;  %v1304_v41 = vsub.f32 %v3170_v55, %v1238_v63  ;;  %v1305_v43 = vsub.f32 %v3172_v56, %v1238_v63  ;;  %1480 = vadd.xlane.f32.xlu1 %v1479_v60  ;;  %v3677_v37 = vld [vmem:[#allocation19_spill] sm:$0xff] }
 0x2da   : > { %v2427_v36 = vpop.eup %2426  ;;  %2446 = vpow2.f32 %v1404_v33  ;;  %v1306_v44 = vsub.f32 %v3168_v50, %v1238_v63  ;;  %v1307_v25 = vsub.f32 %v3174_v57, %v1238_v63  ;;  %v1483_v46 = vadd.f32 %v2419_v40, %v1482_v21  ;;  %v3671_v50 = vld [vmem:[#allocation16_spill] sm:$0xff] }
 0x2db   : > { %v2429_v48 = vpop.eup %2428  ;;  %2448 = vpow2.f32 %v1406_v28  ;;  %v1412_v45 = vmul.f32 1.442695, %v1304_v41  ;;  %v1414_v26 = vmul.f32 1.442695, %v1305_v43  ;;  %v1487_v3 = vadd.f32 %v2425_v23, %v2423_v0  ;;  %v3679_v28 = vld [vmem:[#allocation23_spill] sm:$0xff]  ;;  %v3680_v23 = vld [vmem:[#allocation24_spill] sm:$0xff] }
 0x2dc   : > { %v2431_v49 = vpop.eup %2430  ;;  %2450 = vpow2.f32 %v1408_v8  ;;  %v1416_v4 = vmul.f32 1.442695, %v1306_v44  ;;  %v1484_v2 = vadd.f32 %v2421_v61, %v1483_v46  ;;  %v1418_v56 = vmul.f32 1.442695, %v1307_v25 }
 0x2dd   : > { %v2433_v55 = vpop.eup %2432  ;;  %2452 = vpow2.f32 %v1410_v24  ;;  %v1243_v42 = vpop.permute.xlu1 %1242  ;;  %v1488_v5 = vadd.f32 %v2427_v36, %v1487_v3 }
 0x2de   : > { %v2435_v47 = vpop.eup %2434  ;;  %2454 = vpow2.f32 %v1412_v45  ;;  %1485 = vadd.xlane.f32.xlu0 %v1484_v2  ;;  %v1308_v57 = vsub.f32 %v3671_v50, %v1243_v42  ;;  %v1309_v29 = vsub.f32 %v3672_v6, %v1243_v42  ;;  %v1310_v32 = vsub.f32 %v3673_v58, %v1243_v42  ;;  %v3681_v2 = vld [vmem:[#allocation26_spill] sm:$0xff] }
 0x2df   : > { %v2437_v31 = vpop.eup %2436  ;;  %2456 = vpow2.f32 %v1414_v26  ;;  %v1311_v35 = vsub.f32 %v3674_v34, %v1243_v42  ;;  %v1248_v51 = vpop.permute.xlu0 %1247  ;;  %v1489_v15 = vadd.f32 %v2429_v48, %v1488_v5  ;;  %v1492_v53 = vadd.f32 %v2433_v55, %v2431_v49  ;;  %v3683_v5 = vld [vmem:[#allocation25_spill] sm:$0xff] }
 0x2e0   : > { %v2439_v11 = vpop.eup %2438  ;;  %2458 = vpow2.f32 %v1416_v4  ;;  %v1420_v13 = vmul.f32 1.442695, %v1308_v57  ;;  %v1422_v10 = vmul.f32 1.442695, %v1309_v29  ;;  %v1424_v14 = vmul.f32 1.442695, %v1310_v32 }
 0x2e1   : > { %v2441_v52 = vpop.eup %2440  ;;  %2460 = vpow2.f32 %v1418_v56  ;;  %v1426_v30 = vmul.f32 1.442695, %v1311_v35  ;;  %v1312_v1 = vsub.f32 %v3675_v54, %v1248_v51  ;;  %v1313_v12 = vsub.f32 %v3676_v9, %v1248_v51  ;;  %1490 = vadd.xlane.f32.xlu1 %v1489_v15  ;;  %v3682_v56 = vld [vmem:[#allocation27_spill] sm:$0xff] }
 0x2e2   : > { %v2443_v59 = vpop.eup %2442  ;;  %2462 = vpow2.f32 %v1420_v13  ;;  %v1314_v39 = vsub.f32 %v3677_v37, %v1248_v51  ;;  %v1315_v22 = vsub.f32 %v3678_v17, %v1248_v51  ;;  %v1493_v38 = vadd.f32 %v2435_v47, %v1492_v53 }
 0x2e3   : > { %v2445_v18 = vpop.eup %2444  ;;  %2464 = vpow2.f32 %v1422_v10  ;;  %v1428_v40 = vmul.f32 1.442695, %v1312_v1  ;;  %v1430_v16 = vmul.f32 1.442695, %v1313_v12  ;;  %v1497_v27 = vadd.f32 %v2441_v52, %v2439_v11 }
 0x2e4   : > { %v2447_v20 = vpop.eup %2446  ;;  %2466 = vpow2.f32 %v1424_v14  ;;  %v1432_v61 = vmul.f32 1.442695, %v1314_v39  ;;  %v1494_v19 = vadd.f32 %v2437_v31, %v1493_v38  ;;  %v1434_v60 = vmul.f32 1.442695, %v1315_v22 }
 0x2e5   : > { %v2449_v63 = vpop.eup %2448  ;;  %2468 = vpow2.f32 %v1426_v30  ;;  %v1498_v21 = vadd.f32 %v2443_v59, %v1497_v27  ;;  %v1253_v0 = vpop.permute.xlu1 %1252 }
 0x2e6   : > { %v2451_v33 = vpop.eup %2450  ;;  %2470 = vpow2.f32 %v1428_v40  ;;  %1495 = vadd.xlane.f32.xlu0 %v1494_v19  ;;  %v1316_v8 = vsub.f32 %v3679_v28, %v1253_v0  ;;  %v1317_v24 = vsub.f32 %v3680_v23, %v1253_v0  ;;  %v1318_v41 = vsub.f32 %v3205_v62, %v1253_v0  ;;  %v3686_v28 = vld [vmem:[#allocation30_spill] sm:$0xff] }
 0x2e7   : > { %v2453_v43 = vpop.eup %2452  ;;  %2472 = vpow2.f32 %v1430_v16  ;;  %v1499_v36 = vadd.f32 %v2445_v18, %v1498_v21  ;;  %v1319_v44 = vsub.f32 %v3212_v7, %v1253_v0  ;;  %v1258_v25 = vpop.permute.xlu0 %1257  ;;  %v1502_v46 = vadd.f32 %v2449_v63, %v2447_v20  ;;  %v3684_v7 = vld [vmem:[#allocation28_spill] sm:$0xff] }
 0x2e8   : > { %v2455_v48 = vpop.eup %2454  ;;  %2474 = vpow2.f32 %v1432_v61  ;;  %v1436_v45 = vmul.f32 1.442695, %v1316_v8  ;;  %v1438_v26 = vmul.f32 1.442695, %v1317_v24  ;;  %v1440_v3 = vmul.f32 1.442695, %v1318_v41 }
 0x2e9   : > { %v2457_v49 = vpop.eup %2456  ;;  %2476 = vpow2.f32 %v1434_v60  ;;  %1500 = vadd.xlane.f32.xlu1 %v1499_v36  ;;  %v1442_v4 = vmul.f32 1.442695, %v1319_v44  ;;  %v1320_v55 = vsub.f32 %v3681_v2, %v1258_v25  ;;  %v1321_v62 = vsub.f32 %v3682_v56, %v1258_v25  ;;  %v3688_v24 = vld [vmem:[#allocation31_spill] sm:$0xff]  ;;  %v3689_v41 = vld [vmem:[#allocation32_spill] sm:$0xff]  ;;  %v3691_v44 = vld [vmem:[#allocation33_spill] sm:$0xff] }
 0x2ea   : > { %v2459_v42 = vpop.eup %2458  ;;  %2478 = vpow2.f32 %v1436_v45  ;;  %v1322_v47 = vsub.f32 %v3683_v5, %v1258_v25  ;;  %v1323_v50 = vsub.f32 %v3684_v7, %v1258_v25  ;;  %v1503_v57 = vadd.f32 %v2451_v33, %v1502_v46  ;;  %v3685_v33 = vld [vmem:[#allocation29_spill] sm:$0xff]  ;;  %v3692_v25 = vld [vmem:[#allocation34_spill] sm:$0xff]  ;;  %v3694_v45 = vld [vmem:[#allocation35_spill] sm:$0xff] }
 0x2eb   : > { %v2461_v6 = vpop.eup %2460  ;;  %2480 = vpow2.f32 %v1438_v26  ;;  %v1444_v29 = vmul.f32 1.442695, %v1320_v55  ;;  %v1446_v58 = vmul.f32 1.442695, %v1321_v62  ;;  %v1507_v32 = vadd.f32 %v2457_v49, %v2455_v48  ;;  %v3695_v26 = vld [vmem:[#allocation36_spill] sm:$0xff]  ;;  %v1100_v2 = vld [vmem:[#allocation3] sm:$0xff] }
 0x2ec   : > { %v2463_v31 = vpop.eup %2462  ;;  %2482 = vpow2.f32 %v1440_v3  ;;  %v1504_v34 = vadd.f32 %v2453_v43, %v1503_v57  ;;  %v1448_v51 = vmul.f32 1.442695, %v1322_v47  ;;  %v1450_v10 = vmul.f32 1.442695, %v1323_v50  ;;  %v3697_v55 = vld [vmem:[#allocation37_spill] sm:$0xff]  ;;  %v3698_v56 = vld [vmem:[#allocation39_spill] sm:$0xff] }
 0x2ed   : > { %v2465_v35 = vpop.eup %2464  ;;  %2484 = vpow2.f32 %v1442_v4  ;;  %v1508_v15 = vadd.f32 %v2459_v42, %v1507_v32  ;;  %v3687_v8 = vsub.f32 %v3685_v33, %v3686_v28  ;;  %v3690_v43 = vsub.f32 %v3688_v24, %v3689_v41  ;;  %v1101_v50 = vld [vmem:[#allocation3 + $0x8] sm:$0xff] }
 0x2ee   : > { %v2467_v53 = vpop.eup %2466  ;;  %2486 = vpow2.f32 %v1444_v29  ;;  %1505 = vadd.xlane.f32.xlu0 %v1504_v34  ;;  %v1512_v11 = vadd.f32 %v2465_v35, %v2463_v31  ;;  %v3693_v46 = vsub.f32 %v3691_v44, %v3692_v25  ;;  %v3696_v3 = vsub.f32 %v3694_v45, %v3695_v26  ;;  %v3701_v29 = vld [vmem:[#allocation40_spill] sm:$0xff]  ;;  %v3715_v44 = vld [vmem:[#allocation49_spill] sm:$0xff]  ;;  %v3716_v25 = vld [vmem:[#allocation51_spill] sm:$0xff] }
 0x2ef   : > { %v2469_v13 = vpop.eup %2468  ;;  %2488 = vpow2.f32 %v1446_v58  ;;  %v1509_v14 = vadd.f32 %v2461_v6, %v1508_v15  ;;  %v1132_v23 = vmul.f32 1.442695, %v3687_v8  ;;  %v1134_v36 = vmul.f32 1.442695, %v3690_v43  ;;  %v3700_v6 = vld [vmem:[#allocation38_spill] sm:$0xff] }
 0x2f0   : > { %v2471_v52 = vpop.eup %2470  ;;  %v1513_v30 = vadd.f32 %v2467_v53, %v1512_v11  ;;  %2490 = vpow2.f32 %v1448_v51  ;;  %v1136_v48 = vmul.f32 1.442695, %v3693_v46  ;;  %v1138_v49 = vmul.f32 1.442695, %v3696_v3  ;;  %v1102_v51 = vld [vmem:[#allocation3 + $0x10] sm:$0xff]  ;;  %v3704_v11 = vld [vmem:[#allocation43_spill] sm:$0xff] }
 0x2f1   : > { %v2473_v54 = vpop.eup %2472  ;;  %1510 = vadd.xlane.f32.xlu1 %v1509_v14  ;;  %2492 = vpow2.f32 %v1450_v10  ;;  %v3699_v62 = vsub.f32 %v3697_v55, %v3698_v56  ;;  %v3702_v58 = vsub.f32 %v3700_v6, %v3701_v29  ;;  %v3703_v53 = vld [vmem:[#allocation41_spill] sm:$0xff]  ;;  %v3717_v46 = vsub.f32 %v3715_v44, %v3716_v25  ;;  %v1107_v3 = vld [vmem:[#allocation3 + $0x38] sm:$0xff] }
 0x2f2   : > { %v2475_v1 = vpop.eup %2474  ;;  %v1514_v9 = vadd.f32 %v2469_v13, %v1513_v30  ;;  %v1517_v12 = vadd.f32 %v2473_v54, %v2471_v52  ;;  %2494 = vpow2.f32 %v1132_v23  ;;  %v3705_v13 = vsub.f32 %v3703_v53, %v3704_v11  ;;  %v1103_v54 = vld [vmem:[#allocation3 + $0x18] sm:$0xff] }
 0x2f3   : > { %v2477_v59 = vpop.eup %2476  ;;  %2496 = vpow2.f32 %v1134_v36  ;;  %v1140_v42 = vmul.f32 1.442695, %v3699_v62  ;;  %v1142_v32 = vmul.f32 1.442695, %v3702_v58  ;;  %v1106_v36 = vld [vmem:[#allocation3 + $0x30] sm:$0xff]  ;;  %v1108_v58 = vld [vmem:[#allocation3 + $0x40] sm:$0xff] }
 0x2f4   : > { %v2479_v37 = vpop.eup %2478  ;;  %1515 = vadd.xlane.f32.xlu0 %v1514_v9  ;;  %v1518_v39 = vadd.f32 %v2475_v1, %v1517_v12  ;;  %2498 = vpow2.f32 %v1136_v48  ;;  %v1144_v10 = vmul.f32 1.442695, %v3705_v13  ;;  %v3706_v9 = vld [vmem:[#allocation42_spill] sm:$0xff]  ;;  %v3707_v12 = vld [vmem:[#allocation44_spill] sm:$0xff]  ;;  %v1152_v48 = vmul.f32 1.442695, %v3717_v46 }
 0x2f5   : > { %v2481_v17 = vpop.eup %2480  ;;  %2500 = vpow2.f32 %v1138_v49 }
 0x2f6   : > { %v2483_v22 = vpop.eup %2482  ;;  %v1519_v38 = vadd.f32 %v2477_v59, %v1518_v39  ;;  %v1522_v18 = vadd.f32 %v2481_v17, %v2479_v37  ;;  %2502 = vpow2.f32 %v1140_v42  ;;  %v3708_v59 = vsub.f32 %v3706_v9, %v3707_v12 }
 0x2f7   : > { %v2485_v40 = vpop.eup %2484  ;;  %2504 = vpow2.f32 %v1142_v32 }
 0x2f8   : > { %v2487_v16 = vpop.eup %2486  ;;  %1520 = vadd.xlane.f32.xlu1 %v1519_v38  ;;  %v1523_v27 = vadd.f32 %v2483_v22, %v1522_v18  ;;  %v1146_v37 = vmul.f32 1.442695, %v3708_v59  ;;  %2506 = vpow2.f32 %v1144_v10  ;;  %v1104_v18 = vld [vmem:[#allocation3 + $0x20] sm:$0xff]  ;;  %v1110_v59 = vld [vmem:[#allocation3 + $0x50] sm:$0xff] }
 0x2f9   : > { %v2489_v20 = vpop.eup %2488 }
 0x2fa   : > { %v1524_v61 = vadd.f32 %v2485_v40, %v1523_v27  ;;  %v1527_v19 = vadd.f32 %v2489_v20, %v2487_v16  ;;  %v2491_v63 = vpop.eup %2490  ;;  %2508 = vpow2.f32 %v1146_v37  ;;  %v3709_v40 = vld [vmem:[#allocation45_spill] sm:$0xff]  ;;  %v3710_v16 = vld [vmem:[#allocation47_spill] sm:$0xff] }
 0x2fb   : > { %v2493_v21 = vpop.eup %2492  ;;  %v3711_v27 = vsub.f32 %v3709_v40, %v3710_v16 }
 0x2fc   : > { %1525 = vadd.xlane.f32.xlu0 %v1524_v61  ;;  %v1528_v60 = vadd.f32 %v2491_v63, %v1527_v19  ;;  %v2495_v4 = vpop.eup %2494  ;;  %v1105_v63 = vld [vmem:[#allocation3 + $0x28] sm:$0xff] }
 0x2fd   : > { %v1164_v5 = vmul.f32 %v2495_v4, %v1100_v2  ;;  %v2497_v47 = vpop.eup %2496  ;;  %v1148_v20 = vmul.f32 1.442695, %v3711_v27  ;;  %v3718_v4 = vld [vmem:[#allocation50_spill] sm:$0xff]  ;;  %v3719_v2 = vld [vmem:[#allocation52_spill] sm:$0xff] }
 0x2fe   : > { %v1529_v0 = vadd.f32 %v2493_v21, %v1528_v60  ;;  %v1165_v31 = vmul.f32 %v2497_v47, %v1101_v50  ;;  %v2499_v34 = vpop.eup %2498  ;;  %v3712_v21 = vld [vmem:[#allocation46_spill] sm:$0xff]  ;;  %v3720_v55 = vsub.f32 %v3718_v4, %v3719_v2  ;;  %v3722_v50 = vld [vmem:[#allocation55_spill] sm:$0xff]  ;;  %v1587_v4 = vld [vmem:[#allocation4 + $0x10] sm:$0xff] (!%p2144_p10) }
 0x2ff   : > { %v1166_v14 = vmul.f32 %v2499_v34, %v1102_v51  ;;  %v2501_v52 = vpop.eup %2500  ;;  %2510 = vpow2.f32 %v1148_v20  ;;  %v1109_v34 = vld [vmem:[#allocation3 + $0x48] sm:$0xff]  ;;  %v1635_v2 = vld [vmem:[#allocation9 + $0x10] sm:$0xff] (!%p2144_p10) }
 0x300   : > { %1530 = vadd.xlane.f32.xlu1 %v1529_v0  ;;  %v1167_v39 = vmul.f32 %v2501_v52, %v1103_v54  ;;  %v2503_v22 = vpop.eup %2502  ;;  %v3713_v0 = vld [vmem:[#allocation48_spill] sm:$0xff]  ;;  %v1154_v56 = vmul.f32 1.442695, %v3720_v55  ;;  %v3728_v54 = vld [vmem:[#allocation59_spill] sm:$0xff] }
 0x301   : > { %v2505_v61 = vpop.eup %2504  ;;  %v1168_v19 = vmul.f32 %v2503_v22, %v1104_v18  ;;  %v3714_v33 = vsub.f32 %v3712_v21, %v3713_v0  ;;  %v3725_v51 = vld [vmem:[#allocation56_spill] sm:$0xff]  ;;  %v3730_v22 = vld [vmem:[#allocation58_spill] sm:$0xff]  ;;  %v1585_v55 = vld [vmem:[#allocation4] sm:$0xff] (!%p2144_p10) }
 0x302   : > { %v1169_v23 = vmul.f32 %v2505_v61, %v1105_v63  ;;  %v2507_v41 = vpop.eup %2506 }
 0x303   : > { %v1150_v28 = vmul.f32 1.442695, %v3714_v33  ;;  %v1170_v26 = vmul.f32 %v2507_v41, %v1106_v36 }
 0x304   : > { %v2509_v45 = vpop.eup %2508 }
 0x305   : > { %2512 = vpow2.f32 %v1150_v28  ;;  %v1171_v42 = vmul.f32 %v2509_v45, %v1107_v3  ;;  %v1113_v28 = vld [vmem:[#allocation3 + $0x68] sm:$0xff] }
 0x306   : > { %2514 = vpow2.f32 %v1152_v48  ;;  %v1115_v48 = vld [vmem:[#allocation3 + $0x78] sm:$0xff] }
 0x307   : > { %2516 = vpow2.f32 %v1154_v56  ;;  %v1605_v56 = vunpack.c.l.bf16 (!%p2144_p10), %v1587_v4 }
 0x309   : > { %v2511_v47 = vpop.eup %2510 }
 0x30f   : > { %v2513_v32 = vpop.eup %2512 }
 0x310   : > { %v1173_v10 = vmul.f32 %v2513_v32, %v1109_v34  ;;  %v2515_v52 = vpop.eup %2514  ;;  %v1586_v32 = vld [vmem:[#allocation4 + $0x8] sm:$0xff] (!%p2144_p10) }
 0x311   : > { %v2517_v37 = vpop.eup %2516 }
 0x352   : > { %v1456_v7 = vpop.xlane.xlu1 %1455 }
 0x353   : > { %v1532_v57 = vadd.f32 %v1456_v7, %v1164_v5  ;;  %v3721_v7 = vld [vmem:[#allocation53_spill] sm:$0xff] }
 0x355   : > { %1549 = vst.msk [vmem:[#allocation3] sm:$0xff] %vm1548_vm1, %v1532_v57  ;;  %v3723_v57 = vsub.f32 %v3721_v7, %v3722_v50  ;;  %v1588_v7 = vld [vmem:[#allocation4 + $0x18] sm:$0xff] (!%p2144_p10) }
 0x356   : > { %v1461_v35 = vpop.xlane.xlu0 %1460  ;;  %v1636_v50 = vld [vmem:[#allocation9 + $0x18] sm:$0xff] (!%p2144_p10) }
 0x357   : > { %v1533_v15 = vadd.f32 %v1461_v35, %v1165_v31  ;;  %v1156_v6 = vmul.f32 1.442695, %v3723_v57  ;;  %v1172_v31 = vmul.f32 %v2511_v47, %v1108_v58  ;;  %v3724_v35 = vld [vmem:[#allocation54_spill] sm:$0xff]  ;;  %v1633_v47 = vld [vmem:[#allocation9] sm:$0xff] (!%p2144_p10)  ;;  %v1601_v57 = vunpack.c.l.bf16 (!%p2144_p10), %v1585_v55 }
 0x358   : > { %v1650_v58 = vunpack.c.h.bf16 (!%p2144_p10), %v1633_v47 }
 0x359   : > { %1550 = vst.msk [vmem:[#allocation3 + $0x8] sm:$0xff] %vm1548_vm1, %v1533_v15  ;;  %2518 = vpow2.f32 %v1156_v6  ;;  %v3726_v15 = vsub.f32 %v3724_v35, %v3725_v51  ;;  %v1602_v6 = vunpack.c.h.bf16 (!%p2144_p10), %v1585_v55  ;;  %v1607_v51 = vunpack.c.l.bf16 (!%p2144_p10), %v1588_v7  ;;  %v1598_v55 = vld [vmem:[#allocation4 + $0x68] sm:$0xff] (!%p2144_p10) }
 0x35a   : > { %v1466_v30 = vpop.xlane.xlu0 %1465 }
 0x35b   : > { %v1534_v1 = vadd.f32 %v1466_v30, %v1166_v14  ;;  %v1158_v53 = vmul.f32 1.442695, %v3726_v15  ;;  %v3727_v30 = vld [vmem:[#allocation57_spill] sm:$0xff]  ;;  %v1608_v15 = vunpack.c.h.bf16 (!%p2144_p10), %v1588_v7 }
 0x35d   : > { %1551 = vst.msk [vmem:[#allocation3 + $0x10] sm:$0xff] %vm1548_vm1, %v1534_v1  ;;  %2520 = vpow2.f32 %v1158_v53  ;;  %v3729_v1 = vsub.f32 %v3727_v30, %v3728_v54  ;;  %v1603_v54 = vunpack.c.l.bf16 (!%p2144_p10), %v1586_v32 }
 0x35e   : > { %v1471_v17 = vpop.xlane.xlu1 %1470 }
 0x35f   : > { %v1535_v38 = vadd.f32 %v1471_v17, %v1167_v39  ;;  %v1160_v9 = vmul.f32 1.442695, %v3729_v1  ;;  %v1174_v39 = vmul.f32 %v2515_v52, %v1110_v59  ;;  %v1111_v17 = vld [vmem:[#allocation3 + $0x58] sm:$0xff]  ;;  %v1638_v52 = vld [vmem:[#allocation9 + $0x28] sm:$0xff] (!%p2144_p10)  ;;  %v1604_v1 = vunpack.c.h.bf16 (!%p2144_p10), %v1586_v32 }
 0x360   : > { %v1175_v61 = vmul.f32 %v2517_v37, %v1111_v17 }
 0x361   : > { %1552 = vst.msk [vmem:[#allocation3 + $0x18] sm:$0xff] %vm1548_vm1, %v1535_v38  ;;  %2522 = vpow2.f32 %v1160_v9  ;;  %v3731_v38 = vld [vmem:[#allocation60_spill] sm:$0xff] }
 0x362   : > { %v3732_v18 = vsub.f32 %v3730_v22, %v3731_v38  ;;  %v1640_v22 = vld [vmem:[#allocation9 + $0x38] sm:$0xff] (!%p2144_p10) }
 0x363   : > { %v1476_v60 = vpop.xlane.xlu0 %1475  ;;  %v2519_v20 = vpop.eup %2518 }
 0x364   : > { %v1536_v8 = vadd.f32 %v1476_v60, %v1168_v19  ;;  %v1162_v40 = vmul.f32 1.442695, %v3732_v18  ;;  %v1112_v19 = vld [vmem:[#allocation3 + $0x60] sm:$0xff] }
 0x365   : > { %v1176_v21 = vmul.f32 %v2519_v20, %v1112_v19  ;;  %v1660_v19 = vunpack.c.h.bf16 (!%p2144_p10), %v1638_v52 }
 0x366   : > { %1553 = vst.msk [vmem:[#allocation3 + $0x20] sm:$0xff] %vm1548_vm1, %v1536_v8  ;;  %v1481_v24 = vpop.xlane.xlu1 %1480  ;;  %2524 = vpow2.f32 %v1162_v40 }
 0x367   : > { %v1537_v43 = vadd.f32 %v1481_v24, %v1169_v23  ;;  %v2521_v0 = vpop.eup %2520 }
 0x368   : > { %v1177_v23 = vmul.f32 %v2521_v0, %v1113_v28  ;;  %v1664_v28 = vunpack.c.h.bf16 (!%p2144_p10), %v1640_v22 }
 0x369   : > { %1554 = vst.msk [vmem:[#allocation3 + $0x28] sm:$0xff] %vm1548_vm1, %v1537_v43  ;;  %v1114_v43 = vld [vmem:[#allocation3 + $0x70] sm:$0xff] }
 0x36b   : > { %v1486_v49 = vpop.xlane.xlu0 %1485  ;;  %v2523_v24 = vpop.eup %2522 }
 0x36c   : > { %v1538_v62 = vadd.f32 %v1486_v49, %v1170_v26  ;;  %v1178_v44 = vmul.f32 %v2523_v24, %v1114_v43 }
 0x36e   : > { %1555 = vst.msk [vmem:[#allocation3 + $0x30] sm:$0xff] %vm1548_vm1, %v1538_v62  ;;  %v1491_v5 = vpop.xlane.xlu1 %1490  ;;  %v1606_v62 = vunpack.c.h.bf16 (!%p2144_p10), %v1587_v4 }
 0x36f   : > { %v1539_v29 = vadd.f32 %v1491_v5, %v1171_v42  ;;  %v1653_v42 = vunpack.c.l.bf16 (!%p2144_p10), %v1635_v2  ;;  %v1654_v5 = vunpack.c.h.bf16 (!%p2144_p10), %v1635_v2 }
 0x370   : > { %v2525_v25 = vpop.eup %2524 }
 0x371   : > { %1556 = vst.msk [vmem:[#allocation3 + $0x38] sm:$0xff] %vm1548_vm1, %v1539_v29  ;;  %v1179_v26 = vmul.f32 %v2525_v25, %v1115_v48  ;;  %v1649_v29 = vunpack.c.l.bf16 (!%p2144_p10), %v1633_v47  ;;  %v1685_v34 = vmul.f32 (!%p2144_p10), %v1653_v42, %v1605_v56  ;;  %v1686_v35 = vmul.f32 (!%p2144_p10), %v1654_v5, %v1606_v62  ;;  %v1646_v5 = vld [vmem:[#allocation9 + $0x68] sm:$0xff] (!%p2144_p10) }
 0x373   : > { %v1496_v11 = vpop.xlane.xlu0 %1495  ;;  %v1681_v53 = vmul.f32 (!%p2144_p10), %v1649_v29, %v1601_v57  ;;  %v1719_v30 = vadd.f32 (!%p2144_p10), %v1686_v35, %v1685_v34  ;;  %v1639_v34 = vld [vmem:[#allocation9 + $0x30] sm:$0xff] (!%p2144_p10) }
 0x374   : > { %v1540_v13 = vadd.f32 %v1496_v11, %v1172_v31  ;;  %v1634_v31 = vld [vmem:[#allocation9 + $0x8] sm:$0xff] (!%p2144_p10)  ;;  %v1682_v11 = vmul.f32 (!%p2144_p10), %v1650_v58, %v1602_v6  ;;  %v1591_v6 = vld [vmem:[#allocation4 + $0x30] sm:$0xff] (!%p2144_p10) }
 0x375   : > { %v1651_v9 = vunpack.c.l.bf16 (!%p2144_p10), %v1634_v31  ;;  %v1652_v17 = vunpack.c.h.bf16 (!%p2144_p10), %v1634_v31  ;;  %1720 = vadd.xlane.f32.xlu1 (!%p2144_p10), %v1719_v30  ;;  %v1627_v31 = vunpack.c.l.bf16 (!%p2144_p10), %v1598_v55 }
 0x376   : > { %1557 = vst.msk [vmem:[#allocation3 + $0x40] sm:$0xff] %vm1548_vm1, %v1540_v13  ;;  %v1501_v14 = vpop.xlane.xlu1 %1500  ;;  %v1655_v13 = vunpack.c.l.bf16 (!%p2144_p10), %v1636_v50  ;;  %v1713_v59 = vadd.f32 (!%p2144_p10), %v1682_v11, %v1681_v53  ;;  %v1676_v53 = vunpack.c.h.bf16 (!%p2144_p10), %v1646_v5 }
 0x377   : > { %v1541_v12 = vadd.f32 %v1501_v14, %v1173_v10  ;;  %v1656_v10 = vunpack.c.h.bf16 (!%p2144_p10), %v1636_v50  ;;  %v1590_v14 = vld [vmem:[#allocation4 + $0x28] sm:$0xff] (!%p2144_p10)  ;;  %v1683_v38 = vmul.f32 (!%p2144_p10), %v1651_v9, %v1603_v54  ;;  %v1661_v54 = vunpack.c.l.bf16 (!%p2144_p10), %v1639_v34  ;;  %v1648_v9 = vld [vmem:[#allocation9 + $0x78] sm:$0xff] (!%p2144_p10) }
 0x378   : > { %v1687_v37 = vmul.f32 (!%p2144_p10), %v1655_v13, %v1607_v51  ;;  %v1611_v18 = vunpack.c.l.bf16 (!%p2144_p10), %v1590_v14  ;;  %v1612_v40 = vunpack.c.h.bf16 (!%p2144_p10), %v1590_v14  ;;  %1714 = vadd.xlane.f32.xlu0 (!%p2144_p10), %v1713_v59  ;;  %v1628_v51 = vunpack.c.h.bf16 (!%p2144_p10), %v1598_v55  ;;  %v1641_v59 = vld [vmem:[#allocation9 + $0x40] sm:$0xff] (!%p2144_p10) }
 0x379   : > { %1558 = vst.msk [vmem:[#allocation3 + $0x48] sm:$0xff] %vm1548_vm1, %v1541_v12  ;;  %v1592_v12 = vld [vmem:[#allocation4 + $0x38] sm:$0xff] (!%p2144_p10)  ;;  %v1614_v14 = vunpack.c.h.bf16 (!%p2144_p10), %v1591_v6 }
 0x37a   : > { %v1616_v0 = vunpack.c.h.bf16 (!%p2144_p10), %v1592_v12 }
 0x37b   : > { %v1506_v16 = vpop.xlane.xlu0 %1505 }
 0x37c   : > { %v1542_v27 = vadd.f32 %v1506_v16, %v1174_v39  ;;  %v1688_v39 = vmul.f32 (!%p2144_p10), %v1656_v10, %v1608_v15  ;;  %v1659_v16 = vunpack.c.l.bf16 (!%p2144_p10), %v1638_v52  ;;  %v1696_v25 = vmul.f32 (!%p2144_p10), %v1664_v28, %v1616_v0  ;;  %v1600_v52 = vld [vmem:[#allocation4 + $0x78] sm:$0xff] (!%p2144_p10) }
 0x37d   : > { %v1675_v15 = vunpack.c.l.bf16 (!%p2144_p10), %v1646_v5  ;;  %v1613_v10 = vunpack.c.l.bf16 (!%p2144_p10), %v1591_v6  ;;  %v1680_v0 = vunpack.c.h.bf16 (!%p2144_p10), %v1648_v9  ;;  %v2747_v6 = vmov (!%p2144_p10), 0  }
 0x37e   : > { %1559 = vst.msk [vmem:[#allocation3 + $0x50] sm:$0xff] %vm1548_vm1, %v1542_v27  ;;  %v1511_v63 = vpop.xlane.xlu1 %1510  ;;  %v1594_v27 = vld [vmem:[#allocation4 + $0x48] sm:$0xff] (!%p2144_p10)  ;;  %v1722_v20 = vadd.f32 (!%p2144_p10), %v1688_v39, %v1687_v37  ;;  %2526 = vset.pattern.permute.xlu0 (!%p2144_p10), %v2747_v6  ;;  %2527 = vset.pattern.permute.xlu1 (!%p2144_p10), %v2747_v6 }
 0x37f   : > { %v1543_v60 = vadd.f32 %v1511_v63, %v1175_v61  ;;  %v1684_v61 = vmul.f32 (!%p2144_p10), %v1652_v17, %v1604_v1  ;;  %v1615_v63 = vunpack.c.l.bf16 (!%p2144_p10), %v1592_v12  ;;  %v1619_v43 = vunpack.c.l.bf16 (!%p2144_p10), %v1594_v27  ;;  %v1593_v12 = vld [vmem:[#allocation4 + $0x40] sm:$0xff] (!%p2144_p10) }
 0x380   : > { %1723 = vadd.xlane.f32.xlu1 (!%p2144_p10), %v1722_v20  ;;  %v1662_v1 = vunpack.c.h.bf16 (!%p2144_p10), %v1639_v34  ;;  %v1707_v39 = vmul.f32 (!%p2144_p10), %v1675_v15, %v1627_v31  ;;  %v1708_v17 = vmul.f32 (!%p2144_p10), %v1676_v53, %v1628_v51  ;;  %v1679_v20 = vunpack.c.l.bf16 (!%p2144_p10), %v1648_v9  ;;  %v1778_v51 = vld [vmem:[#allocation3 + $0x8] sm:$0xff] (!%p2144_p10)  ;;  %v1779_v15 = vld [vmem:[#allocation3 + $0x10] sm:$0xff] (!%p2144_p10)  ;;  %v1780_v53 = vld [vmem:[#allocation3 + $0x18] sm:$0xff] (!%p2144_p10) }
 0x381   : > { %1560 = vst.msk [vmem:[#allocation3 + $0x58] sm:$0xff] %vm1548_vm1, %v1543_v60  ;;  %v1516_v33 = vpop.xlane.xlu0 %1515  ;;  %v1642_v60 = vld [vmem:[#allocation9 + $0x48] sm:$0xff] (!%p2144_p10)  ;;  %v1716_v24 = vadd.f32 (!%p2144_p10), %v1684_v61, %v1683_v38  ;;  %v1693_v38 = vmul.f32 (!%p2144_p10), %v1661_v54, %v1613_v10  ;;  %v1617_v61 = vunpack.c.l.bf16 (!%p2144_p10), %v1593_v12 }
 0x382   : > { %v1544_v8 = vadd.f32 %v1516_v33, %v1176_v21  ;;  %v1691_v21 = vmul.f32 (!%p2144_p10), %v1659_v16, %v1611_v18  ;;  %v1663_v33 = vunpack.c.l.bf16 (!%p2144_p10), %v1640_v22  ;;  %v1668_v48 = vunpack.c.h.bf16 (!%p2144_p10), %v1642_v60  ;;  %v1595_v22 = vld [vmem:[#allocation4 + $0x50] sm:$0xff] (!%p2144_p10)  ;;  %v1786_v10 = vld [vmem:[#allocation3 + $0x48] sm:$0xff] (!%p2144_p10) }
 0x383   : > { %1717 = vadd.xlane.f32.xlu0 (!%p2144_p10), %v1716_v24  ;;  %v1694_v18 = vmul.f32 (!%p2144_p10), %v1662_v1, %v1614_v14  ;;  %v1632_v16 = vunpack.c.h.bf16 (!%p2144_p10), %v1600_v52  ;;  %v1621_v28 = vunpack.c.l.bf16 (!%p2144_p10), %v1595_v22  ;;  %v1622_v24 = vunpack.c.h.bf16 (!%p2144_p10), %v1595_v22  ;;  %v1782_v54 = vld [vmem:[#allocation3 + $0x28] sm:$0xff] (!%p2144_p10)  ;;  %v1783_v22 = vld [vmem:[#allocation3 + $0x30] sm:$0xff] (!%p2144_p10) }
 0x384   : > { %1561 = vst.msk [vmem:[#allocation3 + $0x60] sm:$0xff] %vm1548_vm1, %v1544_v8  ;;  %v1589_v8 = vld [vmem:[#allocation4 + $0x20] sm:$0xff] (!%p2144_p10) }
 0x385   : > { %v1521_v41 = vpop.xlane.xlu1 %1520  ;;  %v1610_v4 = vunpack.c.h.bf16 (!%p2144_p10), %v1589_v8  ;;  %v1712_v55 = vmul.f32 (!%p2144_p10), %v1680_v0, %v1632_v16  ;;  %v1764_v0 = vld [vmem:[#allocation2 + $0x18] sm:$0xff] (!%p2144_p10) }
 0x386   : > { %v1545_v36 = vadd.f32 %v1521_v41, %v1177_v23  ;;  %v1637_v23 = vld [vmem:[#allocation9 + $0x20] sm:$0xff] (!%p2144_p10)  ;;  %v1692_v41 = vmul.f32 (!%p2144_p10), %v1660_v19, %v1612_v40  ;;  %v1631_v40 = vunpack.c.l.bf16 (!%p2144_p10), %v1600_v52  ;;  %v1618_v19 = vunpack.c.h.bf16 (!%p2144_p10), %v1593_v12 }
 0x387   : > { %v1657_v2 = vunpack.c.l.bf16 (!%p2144_p10), %v1637_v23  ;;  %v1658_v42 = vunpack.c.h.bf16 (!%p2144_p10), %v1637_v23 }
 0x388   : > { %1562 = vst.msk [vmem:[#allocation3 + $0x68] sm:$0xff] %vm1548_vm1, %v1545_v36  ;;  %v1620_v36 = vunpack.c.h.bf16 (!%p2144_p10), %v1594_v27  ;;  %v1643_v27 = vld [vmem:[#allocation9 + $0x50] sm:$0xff] (!%p2144_p10)  ;;  %v1788_v9 = vld [vmem:[#allocation3 + $0x58] sm:$0xff] (!%p2144_p10) }
 0x389   : > { %v1526_v46 = vpop.xlane.xlu0 %1525  ;;  %v1690_v58 = vmul.f32 (!%p2144_p10), %v1658_v42, %v1610_v4  ;;  %v1752_v4 = vadd.f32 (!%p2144_p10), %v1708_v17, %v1707_v39 }
 0x38a   : > { %v1546_v45 = vadd.f32 %v1526_v46, %v1178_v44  ;;  %1584 = sbr.rel (%p2144_p10) target bundleno = 1219 (0x4c3), region = 52  ;;  %v1695_v44 = vmul.f32 (!%p2144_p10), %v1663_v33, %v1615_v63  ;;  %v1667_v46 = vunpack.c.l.bf16 (!%p2144_p10), %v1642_v60  ;;  %v1700_v62 = vmul.f32 (!%p2144_p10), %v1668_v48, %v1620_v36  ;;  %v1597_v60 = vld [vmem:[#allocation4 + $0x60] sm:$0xff] (!%p2144_p10)  ;;  %v1647_v48 = vld [vmem:[#allocation9 + $0x70] sm:$0xff] (!%p2144_p10) }
 0x38b   : > { %v1665_v63 = vunpack.c.l.bf16 (!%p2144_p10), %v1641_v59  ;;  %v1666_v33 = vunpack.c.h.bf16 (!%p2144_p10), %v1641_v59 }
 0x38c   : > { %1563 = vst.msk [vmem:[#allocation3 + $0x70] sm:$0xff] %vm1548_vm1, %v1546_v45  ;;  %v1596_v45 = vld [vmem:[#allocation4 + $0x58] sm:$0xff] (!%p2144_p10)  ;;  %v1699_v56 = vmul.f32 (!%p2144_p10), %v1667_v46, %v1619_v43  ;;  %v1734_v29 = vadd.f32 (!%p2144_p10), %v1696_v25, %v1695_v44  ;;  %v1670_v43 = vunpack.c.h.bf16 (!%p2144_p10), %v1643_v27  ;;  %v1625_v44 = vunpack.c.l.bf16 (!%p2144_p10), %v1597_v60  ;;  %v1599_v46 = vld [vmem:[#allocation4 + $0x70] sm:$0xff] (!%p2144_p10) }
 0x38d   : > { %v1531_v3 = vpop.xlane.xlu1 %1530  ;;  %v1623_v7 = vunpack.c.l.bf16 (!%p2144_p10), %v1596_v45  ;;  %v1624_v50 = vunpack.c.h.bf16 (!%p2144_p10), %v1596_v45  ;;  %v1697_v23 = vmul.f32 (!%p2144_p10), %v1665_v63, %v1617_v61  ;;  %v1698_v36 = vmul.f32 (!%p2144_p10), %v1666_v33, %v1618_v19 }
 0x38e   : > { %v1547_v49 = vadd.f32 %v1531_v3, %v1179_v26  ;;  %v1644_v26 = vld [vmem:[#allocation9 + $0x58] sm:$0xff] (!%p2144_p10)  ;;  %v1728_v3 = vadd.f32 (!%p2144_p10), %v1692_v41, %v1691_v21  ;;  %v1740_v30 = vadd.f32 (!%p2144_p10), %v1700_v62, %v1699_v56  ;;  %v1731_v21 = vadd.f32 (!%p2144_p10), %v1694_v18, %v1693_v38  ;;  %v1763_v18 = vld [vmem:[#allocation2 + $0x10] sm:$0xff] (!%p2144_p10) }
 0x38f   : > { %v1671_v57 = vunpack.c.l.bf16 (!%p2144_p10), %v1644_v26  ;;  %v1672_v32 = vunpack.c.h.bf16 (!%p2144_p10), %v1644_v26  ;;  %v1669_v41 = vunpack.c.l.bf16 (!%p2144_p10), %v1643_v27  ;;  %v1626_v25 = vunpack.c.h.bf16 (!%p2144_p10), %v1597_v60  ;;  %v1790_v16 = vld [vmem:[#allocation3 + $0x68] sm:$0xff] (!%p2144_p10)  ;;  %v1784_v60 = vld [vmem:[#allocation3 + $0x38] sm:$0xff] (!%p2144_p10) }
 0x390   : > { %1564 = vst.msk [vmem:[#allocation3 + $0x78] sm:$0xff] %vm1548_vm1, %v1547_v49  ;;  %v1609_v49 = vunpack.c.l.bf16 (!%p2144_p10), %v1589_v8  ;;  %1729 = vadd.xlane.f32.xlu1 (!%p2144_p10), %v1728_v3  ;;  %v1645_v8 = vld [vmem:[#allocation9 + $0x60] sm:$0xff] (!%p2144_p10)  ;;  %v1702_v26 = vmul.f32 (!%p2144_p10), %v1670_v43, %v1622_v24  ;;  %v1737_v56 = vadd.f32 (!%p2144_p10), %v1698_v36, %v1697_v23  ;;  %v1629_v42 = vunpack.c.l.bf16 (!%p2144_p10), %v1599_v46 }
 0x391   : > { %v1703_v35 = vmul.f32 %v1671_v57, %v1623_v7  ;;  %v1704_v13 = vmul.f32 %v1672_v32, %v1624_v50  ;;  %v1701_v45 = vmul.f32 %v1669_v41, %v1621_v28  ;;  %v1673_v3 = vunpack.c.l.bf16 %v1645_v8 }
 0x392   : > { %v1689_v47 = vmul.f32 %v1657_v2, %v1609_v49  ;;  %v1674_v49 = vunpack.c.h.bf16 %v1645_v8  ;;  %v1711_v2 = vmul.f32 %v1679_v20, %v1631_v40  ;;  %v1630_v5 = vunpack.c.h.bf16 %v1599_v46 }
 0x393   : > { %v1746_v37 = vadd.f32 %v1704_v13, %v1703_v35  ;;  %v1743_v62 = vadd.f32 %v1702_v26, %v1701_v45  ;;  %v1705_v7 = vmul.f32 %v1673_v3, %v1625_v44  ;;  %v1678_v57 = vunpack.c.h.bf16 %v1647_v48  ;;  %v1777_v35 = vld [vmem:[#allocation3] sm:$0xff]  ;;  %v1770_v26 = vld [vmem:[#allocation2 + $0x48] sm:$0xff] }
 0x394   : > { %v1725_v11 = vadd.f32 %v1690_v58, %v1689_v47  ;;  %1735 = vadd.xlane.f32.xlu1 %v1734_v29  ;;  %v1677_v47 = vunpack.c.l.bf16 %v1647_v48  ;;  %v1706_v50 = vmul.f32 %v1674_v49, %v1626_v25  ;;  %v1758_v29 = vadd.f32 %v1712_v55, %v1711_v2  ;;  %v1781_v13 = vld [vmem:[#allocation3 + $0x20] sm:$0xff]  ;;  %v1787_v55 = vld [vmem:[#allocation3 + $0x50] sm:$0xff] }
 0x395   : > { %v1710_v31 = vmul.f32 %v1678_v57, %v1630_v5  ;;  %2528 = vlog2.f32 %v1777_v35  ;;  %v1785_v44 = vld [vmem:[#allocation3 + $0x40] sm:$0xff] }
 0x396   : > { %1726 = vadd.xlane.f32.xlu0 %v1725_v11  ;;  %v1749_v58 = vadd.f32 %v1706_v50, %v1705_v7  ;;  %v1709_v32 = vmul.f32 %v1677_v47, %v1629_v42  ;;  %2530 = vlog2.f32 %v1778_v51  ;;  %v1765_v48 = vld [vmem:[#allocation2 + $0x20] sm:$0xff]  ;;  %v1772_v50 = vld [vmem:[#allocation2 + $0x58] sm:$0xff] }
 0x397   : > { %2532 = vlog2.f32 %v1779_v15  ;;  %v1792_v28 = vld [vmem:[#allocation3 + $0x78] sm:$0xff]  ;;  %v1767_v15 = vld [vmem:[#allocation2 + $0x30] sm:$0xff] }
 0x398   : > { %1741 = vadd.xlane.f32.xlu1 %v1740_v30  ;;  %v1755_v34 = vadd.f32 %v1710_v31, %v1709_v32  ;;  %2534 = vlog2.f32 %v1780_v53  ;;  %v1761_v30 = vld [vmem:[#allocation2] sm:$0xff] }
 0x399   : > { %2536 = vlog2.f32 %v1781_v13  ;;  %v1789_v32 = vld [vmem:[#allocation3 + $0x60] sm:$0xff] }
 0x39a   : > { %1732 = vadd.xlane.f32.xlu0 %v1731_v21  ;;  %2538 = vlog2.f32 %v1786_v10 }
 0x39b   : > { %2540 = vlog2.f32 %v1782_v54  ;;  %v1791_v54 = vld [vmem:[#allocation3 + $0x70] sm:$0xff] }
 0x39c   : > { %1747 = vadd.xlane.f32.xlu1 %v1746_v37  ;;  %v1762_v37 = vld [vmem:[#allocation2 + $0x8] sm:$0xff]  ;;  %2542 = vlog2.f32 %v1788_v9  ;;  %v1768_v9 = vld [vmem:[#allocation2 + $0x38] sm:$0xff] }
 0x39d   : > { %2544 = vlog2.f32 %v1783_v22 }
 0x39e   : > { %1738 = vadd.xlane.f32.xlu0 %v1737_v56  ;;  %2546 = vlog2.f32 %v1790_v16 }
 0x39f   : > { %v2529_v11 = vpop.eup %2528  ;;  %2548 = vlog2.f32 %v1784_v60 }
 0x3a0   : > { %1753 = vadd.xlane.f32.xlu1 %v1752_v4  ;;  %v1794_v14 = vmul.f32 0.6931472, %v2529_v11  ;;  %v2531_v52 = vpop.eup %2530  ;;  %2550 = vlog2.f32 %v1792_v28  ;;  %v1774_v11 = vld [vmem:[#allocation2 + $0x68] sm:$0xff]  ;;  %v1771_v28 = vld [vmem:[#allocation2 + $0x50] sm:$0xff] }
 0x3a1   : > { %v2533_v1 = vpop.eup %2532  ;;  %v1796_v59 = vmul.f32 0.6931472, %v2531_v52  ;;  %2552 = vlog2.f32 %v1785_v44 }
 0x3a2   : > { %1744 = vadd.xlane.f32.xlu0 %v1743_v62  ;;  %v1825_v12 = vadd.f32 %v1794_v14, %v1761_v30  ;;  %v1798_v39 = vmul.f32 0.6931472, %v2533_v1  ;;  %v2535_v38 = vpop.eup %2534  ;;  %v1766_v62 = vld [vmem:[#allocation2 + $0x28] sm:$0xff]  ;;  %2554 = vlog2.f32 %v1787_v55 }
 0x3a3   : > { %v1826_v20 = vadd.f32 %v1796_v59, %v1762_v37  ;;  %v1800_v19 = vmul.f32 0.6931472, %v2535_v38  ;;  %v2537_v21 = vpop.eup %2536  ;;  %2556 = vlog2.f32 %v1789_v32 }
 0x3a4   : > { %1759 = vadd.xlane.f32.xlu1 %v1758_v29  ;;  %v1827_v61 = vadd.f32 %v1798_v39, %v1763_v18  ;;  %v2539_v8 = vpop.eup %2538  ;;  %v1802_v36 = vmul.f32 0.6931472, %v2537_v21  ;;  %v1776_v39 = vld [vmem:[#allocation2 + $0x78] sm:$0xff]  ;;  %2558 = vlog2.f32 %v1791_v54 }
 0x3a5   : > { %v1828_v41 = vadd.f32 %v1800_v19, %v1764_v0  ;;  %v2541_v25 = vpop.eup %2540  ;;  %v1812_v46 = vmul.f32 0.6931472, %v2539_v8 }
 0x3a6   : > { %1750 = vadd.xlane.f32.xlu0 %v1749_v58  ;;  %v2543_v45 = vpop.eup %2542  ;;  %v1804_v49 = vmul.f32 0.6931472, %v2541_v25  ;;  %v1829_v2 = vadd.f32 %v1802_v36, %v1765_v48  ;;  %v1773_v36 = vld [vmem:[#allocation2 + $0x60] sm:$0xff] }
 0x3a7   : > { %v2545_v56 = vpop.eup %2544  ;;  %v1834_v42 = vadd.f32 %v1812_v46, %v1770_v26  ;;  %v1816_v47 = vmul.f32 0.6931472, %v2543_v45  ;;  %v1775_v45 = vld [vmem:[#allocation2 + $0x70] sm:$0xff] }
 0x3a8   : > { %v2547_v7 = vpop.eup %2546  ;;  %v1830_v57 = vadd.f32 %v1804_v49, %v1766_v62  ;;  %v1806_v58 = vmul.f32 0.6931472, %v2545_v56 }
 0x3a9   : > { %v2549_v31 = vpop.eup %2548  ;;  %v1836_v35 = vadd.f32 %v1816_v47, %v1772_v50  ;;  %v1820_v51 = vmul.f32 0.6931472, %v2547_v7 }
 0x3aa   : > { %1756 = vadd.xlane.f32.xlu0 %v1755_v34  ;;  %v2551_v53 = vpop.eup %2550  ;;  %v1808_v14 = vmul.f32 0.6931472, %v2549_v31  ;;  %v1831_v30 = vadd.f32 %v1806_v58, %v1767_v15 }
 0x3ab   : > { %v2553_v1 = vpop.eup %2552  ;;  %v1838_v59 = vadd.f32 %v1820_v51, %v1774_v11  ;;  %v1824_v37 = vmul.f32 0.6931472, %v2551_v53 }
 0x3ac   : > { %v1832_v22 = vadd.f32 %v1808_v14, %v1768_v9  ;;  %v2555_v16 = vpop.eup %2554 }
 0x3ad   : > { %v1814_v21 = vmul.f32 0.6931472, %v2555_v16  ;;  %v2557_v0 = vpop.eup %2556 }
 0x402   : > { %v1721_v17 = vpop.xlane.xlu1 %1720 }
 0x403   : > { %v1843_v24 = vsub.f32 %v1721_v17, %v1827_v61  ;;  %v1769_v61 = vld [vmem:[#allocation2 + $0x40] sm:$0xff] }
 0x405   : > { %v1715_v40 = vpop.xlane.xlu0 %1714 }
 0x406   : > { %v1841_v27 = vsub.f32 %v1715_v40, %v1825_v12  ;;  %v1810_v40 = vmul.f32 0.6931472, %v2553_v1 }
 0x408   : > { %1859 = vperm.xlu0 %2526, %v1841_v27   ;;  %v1833_v60 = vadd.f32 %v1810_v40, %v1769_v61 }
 0x40d   : > { %v1724_v63 = vpop.xlane.xlu1 %1723 }
 0x40e   : > { %v1844_v3 = vsub.f32 %v1724_v63, %v1828_v41  ;;  %v1818_v41 = vmul.f32 0.6931472, %v2557_v0 }
 0x410   : > { %v1718_v33 = vpop.xlane.xlu0 %1717  ;;  %v1837_v46 = vadd.f32 %v1818_v41, %v1773_v36 }
 0x411   : > { %v1842_v23 = vsub.f32 %v1718_v33, %v1826_v20  ;;  %v1840_v20 = vadd.f32 %v1824_v37, %v1776_v39 }
 0x413   : > { %1864 = vperm.xlu1 %2527, %v1842_v23  }
 0x417   : > { %1869 = vperm.xlu1 %2527, %v1843_v24   ;;  %v1835_v24 = vadd.f32 %v1814_v21, %v1771_v28 }
 0x41b   : > { %1874 = vperm.xlu1 %2527, %v1844_v3  }
 0x41d   : > { %v1730_v43 = vpop.xlane.xlu1 %1729 }
 0x41e   : > { %v1846_v10 = vsub.f32 %v1730_v43, %v1830_v57  ;;  %v2559_v43 = vpop.eup %2558 }
 0x41f   : > { %v1822_v48 = vmul.f32 0.6931472, %v2559_v43 }
 0x421   : > { %v1736_v4 = vpop.xlane.xlu1 %1735  ;;  %v1839_v3 = vadd.f32 %v1822_v48, %v1775_v45 }
 0x422   : > { %v1848_v19 = vsub.f32 %v1736_v4, %v1832_v22 }
 0x423   : > { %v1727_v5 = vpop.xlane.xlu0 %1726 }
 0x424   : > { %v1845_v29 = vsub.f32 %v1727_v5, %v1829_v2 }
 0x425   : > { %v1742_v6 = vpop.xlane.xlu1 %1741 }
 0x426   : > { %v1850_v34 = vsub.f32 %v1742_v6, %v1834_v42  ;;  %1879 = vperm.xlu1 %2527, %v1845_v29  }
 0x427   : > { %v1733_v13 = vpop.xlane.xlu0 %1732 }
 0x428   : > { %1904 = vperm.xlu0 %2526, %v1850_v34   ;;  %v1847_v18 = vsub.f32 %v1733_v13, %v1831_v30 }
 0x429   : > { %v1748_v52 = vpop.xlane.xlu1 %1747 }
 0x42a   : > { %v1852_v12 = vsub.f32 %v1748_v52, %v1836_v35  ;;  %1884 = vperm.xlu1 %2527, %v1846_v10  }
 0x42b   : > { %v1739_v17 = vpop.xlane.xlu0 %1738 }
 0x42c   : > { %1914 = vperm.xlu0 %2526, %v1852_v12   ;;  %v1849_v23 = vsub.f32 %v1739_v17, %v1833_v60 }
 0x42d   : > { %v1754_v38 = vpop.xlane.xlu1 %1753 }
 0x42e   : > { %v1854_v27 = vsub.f32 %v1754_v38, %v1838_v59  ;;  %1889 = vperm.xlu1 %2527, %v1847_v18  }
 0x42f   : > { %v1745_v8 = vpop.xlane.xlu0 %1744 }
 0x430   : > { %1924 = vperm.xlu0 %2526, %v1854_v27   ;;  %v1851_v25 = vsub.f32 %v1745_v8, %v1835_v24 }
 0x431   : > { %v1760_v63 = vpop.xlane.xlu1 %1759 }
 0x432   : > { %v1856_v33 = vsub.f32 %v1760_v63, %v1840_v20  ;;  %1894 = vperm.xlu1 %2527, %v1848_v19  }
 0x433   : > { %v1751_v44 = vpop.xlane.xlu0 %1750 }
 0x434   : > { %1934 = vperm.xlu0 %2526, %v1856_v33   ;;  %v1853_v26 = vsub.f32 %v1751_v44, %v1837_v46 }
 0x436   : > { %1899 = vperm.xlu1 %2527, %v1849_v23  }
 0x437   : > { %v1757_v49 = vpop.xlane.xlu0 %1756 }
 0x438   : > { %v1855_v4 = vsub.f32 %v1757_v49, %v1839_v3 }
 0x43a   : > { %1909 = vperm.xlu1 %2527, %v1851_v25  }
 0x43e   : > { %1919 = vperm.xlu1 %2527, %v1853_v26  }
 0x442   : > { %1929 = vperm.xlu1 %2527, %v1855_v4  }
 0x487   : > { %v1860_v2 = vpop.permute.xlu0 %1859 }
 0x488   : > { %1937 = vst [vmem:[#allocation10] sm:$0xff] %v1860_v2 }
 0x492   : > { %v1865_v55 = vpop.permute.xlu1 %1864 }
 0x493   : > { %1938 = vst [vmem:[#allocation10 + $0x8] sm:$0xff] %v1865_v55 }
 0x496   : > { %v1870_v56 = vpop.permute.xlu1 %1869 }
 0x497   : > { %1939 = vst [vmem:[#allocation10 + $0x10] sm:$0xff] %v1870_v56 }
 0x49a   : > { %v1875_v62 = vpop.permute.xlu1 %1874 }
 0x49b   : > { %1940 = vst [vmem:[#allocation10 + $0x18] sm:$0xff] %v1875_v62 }
 0x4a5   : > { %v1880_v5 = vpop.permute.xlu1 %1879 }
 0x4a6   : > { %1941 = vst [vmem:[#allocation10 + $0x20] sm:$0xff] %v1880_v5 }
 0x4a7   : > { %v1905_v42 = vpop.permute.xlu0 %1904 }
 0x4a8   : > { %1946 = vst [vmem:[#allocation10 + $0x48] sm:$0xff] %v1905_v42 }
 0x4a9   : > { %v1885_v7 = vpop.permute.xlu1 %1884 }
 0x4aa   : > { %1942 = vst [vmem:[#allocation10 + $0x28] sm:$0xff] %v1885_v7 }
 0x4ab   : > { %v1915_v47 = vpop.permute.xlu0 %1914 }
 0x4ac   : > { %1948 = vst [vmem:[#allocation10 + $0x58] sm:$0xff] %v1915_v47 }
 0x4ad   : > { %v1890_v57 = vpop.permute.xlu1 %1889 }
 0x4ae   : > { %1943 = vst [vmem:[#allocation10 + $0x30] sm:$0xff] %v1890_v57 }
 0x4af   : > { %v1925_v50 = vpop.permute.xlu0 %1924 }
 0x4b0   : > { %1950 = vst [vmem:[#allocation10 + $0x68] sm:$0xff] %v1925_v50 }
 0x4b1   : > { %v1895_v29 = vpop.permute.xlu1 %1894 }
 0x4b2   : > { %1944 = vst [vmem:[#allocation10 + $0x38] sm:$0xff] %v1895_v29 }
 0x4b3   : > { %v1935_v6 = vpop.permute.xlu0 %1934 }
 0x4b4   : > { %1952 = vst [vmem:[#allocation10 + $0x78] sm:$0xff] %v1935_v6 }
 0x4b5   : > { %v1900_v58 = vpop.permute.xlu1 %1899 }
 0x4b6   : > { %1945 = vst [vmem:[#allocation10 + $0x40] sm:$0xff] %v1900_v58 }
 0x4b9   : > { %v1910_v32 = vpop.permute.xlu1 %1909 }
 0x4ba   : > { %1947 = vst [vmem:[#allocation10 + $0x50] sm:$0xff] %v1910_v32 }
 0x4bd   : > { %v1920_v31 = vpop.permute.xlu1 %1919 }
 0x4be   : > { %1949 = vst [vmem:[#allocation10 + $0x60] sm:$0xff] %v1920_v31 }
 0x4c1   : > { %v1930_v34 = vpop.permute.xlu1 %1929 }
 0x4c2   : > { %1951 = vst [vmem:[#allocation10 + $0x70] sm:$0xff] %v1930_v34 }
 0x4c3 PF: > { %p2180_p0 = scmp.eq.s32.totalorder %s2800_s18, 3  ;;  %s2748_s15 = smov [#allocation10]  }
 0x4c4   : > { %s1962_s20 = sshll.u32 %s2748_s15, 4  ;;  %s1963_s20 = int_to_ptr.vmem [resolvable:$true] %s1962_s20 }
 0x4c5   : > { %s2646_s21 = scalar_lea.vmem %s1963_s20, 2048  ;;  %p2653_p1 = scmp.lt.s32.totalorder %s1963_s20, %s1963_s20 }
 0x4c6   : > { %p2647_p11 = scmp.ne.s32.totalorder %s1963_s20, %s2646_s21  ;;  %p2654_p2 = scmp.lt.s32.totalorder %s2646_s21, %s2646_s21 }
 0x4c8   : > { %p2648_p3 = pnand %p2647_p11, %p2180_p0  ;;  %p2655_p8 = por %p2654_p2, %p2653_p1 }
 0x4ca   : > { %p2649_p12 = pneg %p2648_p3 }
 0x4cc   : > { %p2656_p13 = pnand %p2655_p8, %p2649_p12 }
 0x4ce   : > { %2659 = shalt.err (!%p2656_p13)
}
 0x4cf   : > { %s2660_s12 = scalar_lea.hbm %s3563_s3, 2048 }
 0x4d0   : > { %p2661_p4 = scmp.ne.s32.totalorder %s3563_s3, %s2660_s12  ;;  %p2666_p7 = scmp.lt.u32.totalorder %s2660_s12, %s3563_s3 }
 0x4d2   : > { %p2662_p5 = pnand %p2661_p4, %p2180_p0 }
 0x4d4   : > { %p2663_p6 = pneg %p2662_p5 }
 0x4d6   : > { %p2668_p9 = pnand %p2666_p7, %p2663_p6 }
 0x4d8   : > { %2671 = shalt.err (!%p2668_p9)
}
 0x4d9   : > { %s2749_s26 = smov 128   ;;  %s2750_s24 = smov 8  }
 0x4da   : > { %2161 = dma.vmem_to_hbm [thread:$0]  (%p2180_p0), %s1963_s20, 2048, %s3563_s3, [#allocation6], %s2749_s26, %s2749_s26, %s2750_s24  }
 0x4db   : > { %2709 = dma.done.wait (%p2180_p0), [#allocation6], 2048  }
 0x4dc   : > { %2711 = vsyncadd (%p2180_p0), [#allocation6], 4294965248 }
 0x4dd PF: > { %s18_s17 = sadd.s32 1, %s2734_s17   ;;  %s3733_s12 = smov %s2718_s13 }
 0x4de   : > { %p15_p10 = scmp.ge.s32.totalorder %s18_s17, 6   ;;  %s3734_s13 = smov %s2722_s14 }
 0x4df   : > { %s3735_s14 = smov %s2893_s29  ;;  %s3736_s15 = smov %s2730_s16 }
 0x4e0   : > { %s3737_s16 = smov %s3739_s10  ;;  %17 = sbr.rel (!%p15_p10) target bundleno = 6 (0x6), region = 89 }
 0x4e7   :  { %1978 = vsyncpa [#allocation5], 1 }
 0x4e8   :  { %1980 = vsyncpa [#allocation5 + $0x1], 1 }
 0x4e9   :  { %1981 = vsyncpa [#allocation8], 1 }
 0x4ea   :  { %1983 = vsyncpa [#allocation8 + $0x1], 1 }
 0x4eb   :  { %1984 = vsyncpa [#allocation6], 1 }
 0x4ec   :  { %1986 = vsyncpa [#allocation6 + $0x1], 1 }

</bundles_post_ra>
